<compile_context>
chip_gen: v7x
topology: tpu7x:2x2x1
jax: 0.10.0
libtpu: 0.0.40
codegen_flags: <defaults>
</compile_context>

<pallas_src>
import functools

import jax
import jax.numpy as jnp
import numpy as np
from jax import lax
from jax.experimental import pallas as pl
from jax.experimental.pallas import tpu as pltpu


def _ceil_to(x, m):
    return ((x + m - 1) // m) * m


# ----------------------------------------------------------------------------
# Fused kernel
# ----------------------------------------------------------------------------
def make_fused_lstm_kernel(num_layers, seq_len, batch_tile, hidden, unroll):
    """Refs: x, (wih_t, whh_t, b) * num_layers, fc_w_t, fc_b, out, scratches."""
    T, Bt, H = seq_len, batch_tile, hidden

    def kernel(*refs):
        x_ref = refs[0]                                  # (T*Bt, Din)    matmul dtype
        layer_refs = refs[1:1 + 3 * num_layers]
        fcw_ref = refs[1 + 3 * num_layers]               # (H, Op)        matmul dtype
        fcb_ref = refs[2 + 3 * num_layers]               # (1, Op)        f32
        out_ref = refs[3 + 3 * num_layers]               # (Bt, Op)       f32
        scratch = refs[4 + 3 * num_layers:]
        g_sc = scratch[0]                                # (T*Bt, 4H)     f32
        seq_sc = scratch[1] if num_layers > 1 else None  # (T*Bt, H)      f32

        mdt = fcw_ref.dtype                              # matmul operand dtype

        # Lane mask selecting the "g" (cell candidate) gate block; hoisted out
        # of the recurrence.  Only needed when H is not lane (128) aligned.
        if H % 128 != 0:
            lane = lax.broadcasted_iota(jnp.int32, (Bt, 4 * H), 1)
            g_lane_mask = (lane >= 2 * H) & (lane < 3 * H)

        h_last = None
        for layer in range(num_layers):
            wih_ref = layer_refs[3 * layer + 0]          # (Din_l, 4H)
            whh_ref = layer_refs[3 * layer + 1]          # (H,     4H)
            b_ref = layer_refs[3 * layer + 2]            # (1,     4H)

            # ---- Hoisted input projection: one matmul over all timesteps ----
            if layer == 0:
                xin = x_ref[...]
            else:
                xin = seq_sc[...].astype(mdt)
            g_sc[...] = (jnp.dot(xin, wih_ref[...],
                                 preferred_element_type=jnp.float32)
                         + b_ref[...])                    # (T*Bt, 4H) f32

            write_seq = layer < num_layers - 1           # last layer: skip store

            # ---- Sequential recurrence: h/c carried in registers ----
            def step(t, carry):
                h, c = carry
                row = pl.multiple_of(t * Bt, Bt)
                gates = g_sc[pl.ds(row, Bt), :] + jnp.dot(
                    h.astype(mdt), whh_ref[...],
                    preferred_element_type=jnp.float32)   # (Bt, 4H) f32
                if H % 128 == 0:
                    # Gate slices are already lane aligned.
                    i_g = jax.nn.sigmoid(gates[:, 0 * H:1 * H])
                    f_g = jax.nn.sigmoid(gates[:, 1 * H:2 * H])
                    g_g = jnp.tanh(gates[:, 2 * H:3 * H])
                    o_g = jax.nn.sigmoid(gates[:, 3 * H:4 * H])
                else:
                    # Full-vreg transcendentals + one lane-mask select instead
                    # of four sub-128-lane EUP pushes.
                    act = jnp.where(g_lane_mask, jnp.tanh(gates),
                                    jax.nn.sigmoid(gates))
                    i_g = act[:, 0 * H:1 * H]
                    f_g = act[:, 1 * H:2 * H]
                    g_g = act[:, 2 * H:3 * H]
                    o_g = act[:, 3 * H:4 * H]
                c = f_g * c + i_g * g_g
                h = o_g * jnp.tanh(c)
                if write_seq:
                    seq_sc[pl.ds(row, Bt), :] = h
                return (h, c)

            h0 = jnp.zeros((Bt, H), jnp.float32)
            c0 = jnp.zeros((Bt, H), jnp.float32)
            h_last, _ = lax.fori_loop(0, T, step, (h0, c0), unroll=unroll)

        # ---- Final Linear + Sigmoid on the last hidden state (lane-dense O) --
        logits = (jnp.dot(h_last.astype(mdt), fcw_ref[...],
                          preferred_element_type=jnp.float32)
                  + fcb_ref[...])
        out_ref[...] = jax.nn.sigmoid(logits).astype(out_ref.dtype)

    return kernel


# ----------------------------------------------------------------------------
# Wrapper
# ----------------------------------------------------------------------------
@functools.partial(jax.jit,
                   static_argnames=("num_layers", "matmul_dtype", "batch_tile"))
def lst_model_forward(x, lstm_params, fc_w, fc_b, *, num_layers,
                      matmul_dtype=jnp.bfloat16, batch_tile=None):
    """x: (B, T, input_size) -> (B, output_size), mirroring LSTModel.forward."""
    B, T, Din = x.shape
    H = lstm_params[0][1].shape[1]
    O = fc_w.shape[0]

    # Batch tiling: tiles are multiples of 8 sublanes; each tile is one grid
    # step along a "parallel" axis (v7x megacore can split tiles across its 2
    # TensorCores -- for 16 <= B <= 256 pass batch_tile=Bp//2 to feed both).
    if batch_tile is None:
        Bt = min(_ceil_to(B, 8), 128)
    else:
        Bt = int(batch_tile)
    assert Bt % 8 == 0
    Bp = _ceil_to(B, Bt)
    nbt = Bp // Bt
    Op = _ceil_to(O, 128)                      # lane-dense FC output
    unroll = T if T <= 8 else 8                # fixed partial unroll for long T

    # Layout x as (nbt, T*Bt, Din): row t*Bt + i of tile bt holds (batch
    # bt*Bt+i, time t).  One-time HBM relayout; kernel never reshapes.
    xs = jnp.pad(x.astype(matmul_dtype), ((0, Bp - B), (0, 0), (0, 0)))
    xs = xs.reshape(nbt, Bt, T, Din).transpose(0, 2, 1, 3).reshape(nbt, T * Bt, Din)

    args = [xs]
    for layer in range(num_layers):
        wih, whh, bih, bhh = lstm_params[layer]
        args.append(jnp.asarray(wih).astype(matmul_dtype).T)      # (Din_l, 4H)
        args.append(jnp.asarray(whh).astype(matmul_dtype).T)      # (H,     4H)
        args.append((jnp.asarray(bih, jnp.float32)
                     + jnp.asarray(bhh, jnp.float32)).reshape(1, 4 * H))
    fcw_t = jnp.zeros((H, Op), matmul_dtype).at[:, :O].set(
        jnp.asarray(fc_w).astype(matmul_dtype).T)                 # (H, Op)
    fcb = jnp.zeros((1, Op), jnp.float32).at[0, :O].set(
        jnp.asarray(fc_b, jnp.float32))                           # (1, Op)
    args += [fcw_t, fcb]

    # TODO(synk): for large H, stream each layer's W_ih/W_hh from HBM
    # (memory_space=pl.ANY + double-buffered make_async_copy during the
    # previous layer's recurrence) instead of keeping all layers VMEM-resident.
    # TODO(synk): on v7x (64 MiB VMEM) with long T, chunk the hoisted
    # projection (or store g_sc in bf16) instead of one full-sequence buffer.
    in_specs = [pl.BlockSpec((None, T * Bt, Din), lambda b: (b, 0, 0))]
    for a in args[1:]:
        in_specs.append(pl.BlockSpec(a.shape, lambda b: (0, 0)))
    out_spec = pl.BlockSpec((None, Bt, Op), lambda b: (b, 0, 0))

    scratch_shapes = [pltpu.VMEM((T * Bt, 4 * H), jnp.float32)]   # projections
    if num_layers > 1:
        scratch_shapes.append(pltpu.VMEM((T * Bt, H), jnp.float32))  # layer seq

    arg_bytes = sum(int(np.prod(a.shape)) * a.dtype.itemsize for a in args)
    scratch_bytes = (T * Bt * 4 * H + (T * Bt * H if num_layers > 1 else 0)) * 4
    out_bytes = Bt * Op * 4
    vmem_limit = int(min(2 * (arg_bytes + out_bytes) + scratch_bytes + (4 << 20),
                         100 << 20))

    out = pl.pallas_call(
        make_fused_lstm_kernel(num_layers, T, Bt, H, unroll),
        out_shape=jax.ShapeDtypeStruct((nbt, Bt, Op), jnp.float32),
        grid_spec=pltpu.PrefetchScalarGridSpec(
            num_scalar_prefetch=0,
            grid=(nbt,),
            in_specs=in_specs,
            out_specs=out_spec,
            scratch_shapes=scratch_shapes),
        compiler_params=pltpu.CompilerParams(
            dimension_semantics=("parallel",),
            vmem_limit_bytes=vmem_limit),
    )(*args)
    return out.reshape(Bp, Op)[:B, :O]


# ----------------------------------------------------------------------------
# Pure-JAX reference (correctness check)
# ----------------------------------------------------------------------------
def reference_forward(x, lstm_params, fc_w, fc_b, num_layers):
    B, T, _ = x.shape
    seq = x
    for layer in range(num_layers):
        wih, whh, bih, bhh = lstm_params[layer]
        H = whh.shape[1]
        h = jnp.zeros((B, H), jnp.float32)
        c = jnp.zeros((B, H), jnp.float32)
        outs = []
        for t in range(T):
            gates = seq[:, t, :] @ wih.T + bih + h @ whh.T + bhh
            i = jax.nn.sigmoid(gates[:, 0 * H:1 * H])
            f = jax.nn.sigmoid(gates[:, 1 * H:2 * H])
            g = jnp.tanh(gates[:, 2 * H:3 * H])
            o = jax.nn.sigmoid(gates[:, 3 * H:4 * H])
            c = f * c + i * g
            h = o * jnp.tanh(c)
            outs.append(h)
        seq = jnp.stack(outs, axis=1)
    return jax.nn.sigmoid(seq[:, -1, :] @ fc_w.T + fc_b)


# ----------------------------------------------------------------------------
# Main
# ----------------------------------------------------------------------------
if __name__ == "__main__":
    batch, seq_len = 2, 8
    input_size, hidden_size, num_layers, output_size = 4, 32, 2, 1

    keys = jax.random.split(jax.random.PRNGKey(0), 3 + 4 * num_layers)

    scale = 1.0 / np.sqrt(hidden_size)
    lstm_params = []
    k_idx = 0
    for layer in range(num_layers):
        d_in = input_size if layer == 0 else hidden_size
        wih = scale * jax.random.normal(keys[k_idx + 0], (4 * hidden_size, d_in), jnp.float32)
        whh = scale * jax.random.normal(keys[k_idx + 1], (4 * hidden_size, hidden_size), jnp.float32)
        bih = scale * jax.random.normal(keys[k_idx + 2], (4 * hidden_size,), jnp.float32)
        bhh = scale * jax.random.normal(keys[k_idx + 3], (4 * hidden_size,), jnp.float32)
        lstm_params.append((wih, whh, bih, bhh))
        k_idx += 4
    fc_w = scale * jax.random.normal(keys[k_idx + 0], (output_size, hidden_size), jnp.float32)
    fc_b = scale * jax.random.normal(keys[k_idx + 1], (output_size,), jnp.float32)

    x = jax.random.normal(keys[k_idx + 2], (batch, seq_len, input_size), jnp.float32)

    ref = reference_forward(x, lstm_params, fc_w, fc_b, num_layers)

    # Strict-parity path (f32 matmul operands, default precision on both sides).
    out_f32 = lst_model_forward(x, tuple(lstm_params), fc_w, fc_b,
                                num_layers=num_layers, matmul_dtype=jnp.float32)
    out_f32 = jax.block_until_ready(out_f32)
    np.testing.assert_allclose(np.asarray(out_f32), np.asarray(ref),
                               rtol=1e-5, atol=1e-5)

    # Default fast path: bf16 matmul operands (MXU-native on v6e/v7x) with f32
    # accumulation; looser tolerance against the f32 reference.
    out_bf16 = lst_model_forward(x, tuple(lstm_params), fc_w, fc_b,
                                 num_layers=num_layers)
    out_bf16 = jax.block_until_ready(out_bf16)
    np.testing.assert_allclose(np.asarray(out_bf16), np.asarray(ref),
                               rtol=3e-2, atol=3e-2)

    print("KERNEL_OK")
</pallas_src>

<mosaic_0001>
module attributes {stable_mosaic.version = 11 : i64} {
  func.func @kernel(%arg0: i32, %arg1: memref<1x64x4xf32, #tpu.memory_space<vmem>>, %arg2: memref<4x128xf32, #tpu.memory_space<vmem>>, %arg3: memref<32x128xf32, #tpu.memory_space<vmem>>, %arg4: memref<1x128xf32, #tpu.memory_space<vmem>>, %arg5: memref<32x128xf32, #tpu.memory_space<vmem>>, %arg6: memref<32x128xf32, #tpu.memory_space<vmem>>, %arg7: memref<1x128xf32, #tpu.memory_space<vmem>>, %arg8: memref<32x128xf32, #tpu.memory_space<vmem>>, %arg9: memref<1x128xf32, #tpu.memory_space<vmem>>, %arg10: memref<1x8x128xf32, #tpu.memory_space<vmem>>, %arg11: memref<64x128xf32, #tpu.memory_space<vmem>>, %arg12: memref<64x32xf32, #tpu.memory_space<vmem>>) attributes {dimension_semantics = [#tpu.dimension_semantics<parallel>], iteration_bounds = array<i64: 1>, scalar_prefetch = 0 : i64, scratch_operands = 2 : i64, tpu.core_type = #tpu.core_type<tc>, window_params = [{transform_indices = @transform_0, window_bounds = array<i64: 1, 64, 4>}, {pipeline_mode = #tpu.pipeline_mode<synchronous>, transform_indices = @transform_1, window_bounds = array<i64: 4, 128>}, {pipeline_mode = #tpu.pipeline_mode<synchronous>, transform_indices = @transform_2, window_bounds = array<i64: 32, 128>}, {pipeline_mode = #tpu.pipeline_mode<synchronous>, transform_indices = @transform_3, window_bounds = array<i64: 1, 128>}, {pipeline_mode = #tpu.pipeline_mode<synchronous>, transform_indices = @transform_4, window_bounds = array<i64: 32, 128>}, {pipeline_mode = #tpu.pipeline_mode<synchronous>, transform_indices = @transform_5, window_bounds = array<i64: 32, 128>}, {pipeline_mode = #tpu.pipeline_mode<synchronous>, transform_indices = @transform_6, window_bounds = array<i64: 1, 128>}, {pipeline_mode = #tpu.pipeline_mode<synchronous>, transform_indices = @transform_7, window_bounds = array<i64: 32, 128>}, {pipeline_mode = #tpu.pipeline_mode<synchronous>, transform_indices = @transform_8, window_bounds = array<i64: 1, 128>}, {transform_indices = @transform_9, window_bounds = array<i64: 1, 8, 128>}]} {
    %0 = tpu.iota {dimensions = array<i32: 1>} : vector<8x128xi32>
    %c64_i32 = arith.constant 64 : i32
    %1 = vector.broadcast %c64_i32 : i32 to vector<8x128xi32>
    %2 = arith.cmpi sge, %0, %1 : vector<8x128xi32>
    %c96_i32 = arith.constant 96 : i32
    %3 = vector.broadcast %c96_i32 : i32 to vector<8x128xi32>
    %4 = arith.cmpi slt, %0, %3 : vector<8x128xi32>
    %5 = arith.andi %2, %4 : vector<8x128xi1>
    %c0 = arith.constant 0 : index
    %c0_0 = arith.constant 0 : index
    %c0_1 = arith.constant 0 : index
    %6 = vector.load %arg1[%c0, %c0_0, %c0_1] : memref<1x64x4xf32, #tpu.memory_space<vmem>>, vector<1x64x4xf32>
    %7 = vector.shape_cast %6 : vector<1x64x4xf32> to vector<64x4xf32>
    %c0_2 = arith.constant 0 : index
    %c0_3 = arith.constant 0 : index
    %8 = vector.load %arg2[%c0_2, %c0_3] : memref<4x128xf32, #tpu.memory_space<vmem>>, vector<4x128xf32>
    %cst = arith.constant dense<0.000000e+00> : vector<64x128xf32>
    %9 = tpu.matmul %7, %8, %cst {dimension_numbers = #tpu.dot_dimension_numbers<[1], [0], [0], [1], [0, 0, 1, 1], [], []>} : vector<64x4xf32>, vector<4x128xf32>, vector<64x128xf32> -> vector<64x128xf32>
    %c0_4 = arith.constant 0 : index
    %c0_5 = arith.constant 0 : index
    %10 = vector.load %arg4[%c0_4, %c0_5] : memref<1x128xf32, #tpu.memory_space<vmem>>, vector<1x128xf32>
    %11 = vector.broadcast %10 : vector<1x128xf32> to vector<64x128xf32>
    %12 = arith.addf %9, %11 : vector<64x128xf32>
    %c0_6 = arith.constant 0 : index
    %c0_7 = arith.constant 0 : index
    %13 = vector.load %arg11[%c0_6, %c0_7] : memref<64x128xf32, #tpu.memory_space<vmem>>, vector<64x128xf32>
    tpu.vector_store %arg11[%c0_6, %c0_7], %12 {strides = array<i32>} : memref<64x128xf32, #tpu.memory_space<vmem>>, vector<64x128xf32>,
    %cst_8 = arith.constant 0.000000e+00 : f32
    %14 = vector.broadcast %cst_8 : f32 to vector<8x32xf32>
    %cst_9 = arith.constant 0.000000e+00 : f32
    %15 = vector.broadcast %cst_9 : f32 to vector<8x32xf32>
    %c0_i32 = arith.constant 0 : i32
    %c8_i32 = arith.constant 8 : i32
    %16 = arith.muli %c0_i32, %c8_i32 : i32
    %17 = tpu.assume_multiple %16, 8 : i32
    %18 = arith.index_cast %17 : i32 to index
    %c0_10 = arith.constant 0 : index
    %19 = vector.load %arg11[%18, %c0_10] : memref<64x128xf32, #tpu.memory_space<vmem>>, vector<8x128xf32>
    %c0_11 = arith.constant 0 : index
    %c0_12 = arith.constant 0 : index
    %20 = vector.load %arg3[%c0_11, %c0_12] : memref<32x128xf32, #tpu.memory_space<vmem>>, vector<32x128xf32>
    %cst_13 = arith.constant dense<0.000000e+00> : vector<8x128xf32>
    %21 = tpu.matmul %14, %20, %cst_13 {dimension_numbers = #tpu.dot_dimension_numbers<[1], [0], [0], [1], [0, 0, 1, 1], [], []>} : vector<8x32xf32>, vector<32x128xf32>, vector<8x128xf32> -> vector<8x128xf32>
    %22 = arith.addf %19, %21 : vector<8x128xf32>
    %23 = math.tanh %22 : vector<8x128xf32>
    %24 = arith.negf %22 : vector<8x128xf32>
    %25 = math.exp %24 : vector<8x128xf32>
    %cst_14 = arith.constant 1.000000e+00 : f32
    %26 = vector.broadcast %cst_14 : f32 to vector<8x128xf32>
    %27 = arith.addf %26, %25 : vector<8x128xf32>
    %28 = arith.divf %26, %27 : vector<8x128xf32>
    %29 = arith.select %5, %23, %28 : vector<8x128xi1>, vector<8x128xf32>
    %30 = vector.extract_strided_slice %29 {offsets = [0, 0], sizes = [8, 32], strides = [1, 1]} : vector<8x128xf32> to vector<8x32xf32>
    %31 = vector.extract_strided_slice %29 {offsets = [0, 32], sizes = [8, 32], strides = [1, 1]} : vector<8x128xf32> to vector<8x32xf32>
    %32 = vector.extract_strided_slice %29 {offsets = [0, 64], sizes = [8, 32], strides = [1, 1]} : vector<8x128xf32> to vector<8x32xf32>
    %33 = vector.extract_strided_slice %29 {offsets = [0, 96], sizes = [8, 32], strides = [1, 1]} : vector<8x128xf32> to vector<8x32xf32>
    %34 = arith.mulf %31, %15 : vector<8x32xf32>
    %35 = arith.mulf %30, %32 : vector<8x32xf32>
    %36 = arith.addf %34, %35 : vector<8x32xf32>
    %37 = math.tanh %36 : vector<8x32xf32>
    %38 = arith.mulf %33, %37 : vector<8x32xf32>
    %39 = arith.index_cast %17 : i32 to index
    %c0_15 = arith.constant 0 : index
    %40 = vector.load %arg12[%39, %c0_15] : memref<64x32xf32, #tpu.memory_space<vmem>>, vector<8x32xf32>
    tpu.vector_store %arg12[%39, %c0_15], %38 {strides = array<i32>} : memref<64x32xf32, #tpu.memory_space<vmem>>, vector<8x32xf32>,
    %c1_i32 = arith.constant 1 : i32
    %c8_i32_16 = arith.constant 8 : i32
    %41 = arith.muli %c1_i32, %c8_i32_16 : i32
    %42 = tpu.assume_multiple %41, 8 : i32
    %43 = arith.index_cast %42 : i32 to index
    %c0_17 = arith.constant 0 : index
    %44 = vector.load %arg11[%43, %c0_17] : memref<64x128xf32, #tpu.memory_space<vmem>>, vector<8x128xf32>
    %c0_18 = arith.constant 0 : index
    %c0_19 = arith.constant 0 : index
    %45 = vector.load %arg3[%c0_18, %c0_19] : memref<32x128xf32, #tpu.memory_space<vmem>>, vector<32x128xf32>
    %cst_20 = arith.constant dense<0.000000e+00> : vector<8x128xf32>
    %46 = tpu.matmul %38, %45, %cst_20 {dimension_numbers = #tpu.dot_dimension_numbers<[1], [0], [0], [1], [0, 0, 1, 1], [], []>} : vector<8x32xf32>, vector<32x128xf32>, vector<8x128xf32> -> vector<8x128xf32>
    %47 = arith.addf %44, %46 : vector<8x128xf32>
    %48 = math.tanh %47 : vector<8x128xf32>
    %49 = arith.negf %47 : vector<8x128xf32>
    %50 = math.exp %49 : vector<8x128xf32>
    %cst_21 = arith.constant 1.000000e+00 : f32
    %51 = vector.broadcast %cst_21 : f32 to vector<8x128xf32>
    %52 = arith.addf %51, %50 : vector<8x128xf32>
    %53 = arith.divf %51, %52 : vector<8x128xf32>
    %54 = arith.select %5, %48, %53 : vector<8x128xi1>, vector<8x128xf32>
    %55 = vector.extract_strided_slice %54 {offsets = [0, 0], sizes = [8, 32], strides = [1, 1]} : vector<8x128xf32> to vector<8x32xf32>
    %56 = vector.extract_strided_slice %54 {offsets = [0, 32], sizes = [8, 32], strides = [1, 1]} : vector<8x128xf32> to vector<8x32xf32>
    %57 = vector.extract_strided_slice %54 {offsets = [0, 64], sizes = [8, 32], strides = [1, 1]} : vector<8x128xf32> to vector<8x32xf32>
    %58 = vector.extract_strided_slice %54 {offsets = [0, 96], sizes = [8, 32], strides = [1, 1]} : vector<8x128xf32> to vector<8x32xf32>
    %59 = arith.mulf %56, %36 : vector<8x32xf32>
    %60 = arith.mulf %55, %57 : vector<8x32xf32>
    %61 = arith.addf %59, %60 : vector<8x32xf32>
    %62 = math.tanh %61 : vector<8x32xf32>
    %63 = arith.mulf %58, %62 : vector<8x32xf32>
    %64 = arith.index_cast %42 : i32 to index
    %c0_22 = arith.constant 0 : index
    %65 = vector.load %arg12[%64, %c0_22] : memref<64x32xf32, #tpu.memory_space<vmem>>, vector<8x32xf32>
    tpu.vector_store %arg12[%64, %c0_22], %63 {strides = array<i32>} : memref<64x32xf32, #tpu.memory_space<vmem>>, vector<8x32xf32>,
    %c2_i32 = arith.constant 2 : i32
    %c8_i32_23 = arith.constant 8 : i32
    %66 = arith.muli %c2_i32, %c8_i32_23 : i32
    %67 = tpu.assume_multiple %66, 8 : i32
    %68 = arith.index_cast %67 : i32 to index
    %c0_24 = arith.constant 0 : index
    %69 = vector.load %arg11[%68, %c0_24] : memref<64x128xf32, #tpu.memory_space<vmem>>, vector<8x128xf32>
    %c0_25 = arith.constant 0 : index
    %c0_26 = arith.constant 0 : index
    %70 = vector.load %arg3[%c0_25, %c0_26] : memref<32x128xf32, #tpu.memory_space<vmem>>, vector<32x128xf32>
    %cst_27 = arith.constant dense<0.000000e+00> : vector<8x128xf32>
    %71 = tpu.matmul %63, %70, %cst_27 {dimension_numbers = #tpu.dot_dimension_numbers<[1], [0], [0], [1], [0, 0, 1, 1], [], []>} : vector<8x32xf32>, vector<32x128xf32>, vector<8x128xf32> -> vector<8x128xf32>
    %72 = arith.addf %69, %71 : vector<8x128xf32>
    %73 = math.tanh %72 : vector<8x128xf32>
    %74 = arith.negf %72 : vector<8x128xf32>
    %75 = math.exp %74 : vector<8x128xf32>
    %cst_28 = arith.constant 1.000000e+00 : f32
    %76 = vector.broadcast %cst_28 : f32 to vector<8x128xf32>
    %77 = arith.addf %76, %75 : vector<8x128xf32>
    %78 = arith.divf %76, %77 : vector<8x128xf32>
    %79 = arith.select %5, %73, %78 : vector<8x128xi1>, vector<8x128xf32>
    %80 = vector.extract_strided_slice %79 {offsets = [0, 0], sizes = [8, 32], strides = [1, 1]} : vector<8x128xf32> to vector<8x32xf32>
    %81 = vector.extract_strided_slice %79 {offsets = [0, 32], sizes = [8, 32], strides = [1, 1]} : vector<8x128xf32> to vector<8x32xf32>
    %82 = vector.extract_strided_slice %79 {offsets = [0, 64], sizes = [8, 32], strides = [1, 1]} : vector<8x128xf32> to vector<8x32xf32>
    %83 = vector.extract_strided_slice %79 {offsets = [0, 96], sizes = [8, 32], strides = [1, 1]} : vector<8x128xf32> to vector<8x32xf32>
    %84 = arith.mulf %81, %61 : vector<8x32xf32>
    %85 = arith.mulf %80, %82 : vector<8x32xf32>
    %86 = arith.addf %84, %85 : vector<8x32xf32>
    %87 = math.tanh %86 : vector<8x32xf32>
    %88 = arith.mulf %83, %87 : vector<8x32xf32>
    %89 = arith.index_cast %67 : i32 to index
    %c0_29 = arith.constant 0 : index
    %90 = vector.load %arg12[%89, %c0_29] : memref<64x32xf32, #tpu.memory_space<vmem>>, vector<8x32xf32>
    tpu.vector_store %arg12[%89, %c0_29], %88 {strides = array<i32>} : memref<64x32xf32, #tpu.memory_space<vmem>>, vector<8x32xf32>,
    %c3_i32 = arith.constant 3 : i32
    %c8_i32_30 = arith.constant 8 : i32
    %91 = arith.muli %c3_i32, %c8_i32_30 : i32
    %92 = tpu.assume_multiple %91, 8 : i32
    %93 = arith.index_cast %92 : i32 to index
    %c0_31 = arith.constant 0 : index
    %94 = vector.load %arg11[%93, %c0_31] : memref<64x128xf32, #tpu.memory_space<vmem>>, vector<8x128xf32>
    %c0_32 = arith.constant 0 : index
    %c0_33 = arith.constant 0 : index
    %95 = vector.load %arg3[%c0_32, %c0_33] : memref<32x128xf32, #tpu.memory_space<vmem>>, vector<32x128xf32>
    %cst_34 = arith.constant dense<0.000000e+00> : vector<8x128xf32>
    %96 = tpu.matmul %88, %95, %cst_34 {dimension_numbers = #tpu.dot_dimension_numbers<[1], [0], [0], [1], [0, 0, 1, 1], [], []>} : vector<8x32xf32>, vector<32x128xf32>, vector<8x128xf32> -> vector<8x128xf32>
    %97 = arith.addf %94, %96 : vector<8x128xf32>
    %98 = math.tanh %97 : vector<8x128xf32>
    %99 = arith.negf %97 : vector<8x128xf32>
    %100 = math.exp %99 : vector<8x128xf32>
    %cst_35 = arith.constant 1.000000e+00 : f32
    %101 = vector.broadcast %cst_35 : f32 to vector<8x128xf32>
    %102 = arith.addf %101, %100 : vector<8x128xf32>
    %103 = arith.divf %101, %102 : vector<8x128xf32>
    %104 = arith.select %5, %98, %103 : vector<8x128xi1>, vector<8x128xf32>
    %105 = vector.extract_strided_slice %104 {offsets = [0, 0], sizes = [8, 32], strides = [1, 1]} : vector<8x128xf32> to vector<8x32xf32>
    %106 = vector.extract_strided_slice %104 {offsets = [0, 32], sizes = [8, 32], strides = [1, 1]} : vector<8x128xf32> to vector<8x32xf32>
    %107 = vector.extract_strided_slice %104 {offsets = [0, 64], sizes = [8, 32], strides = [1, 1]} : vector<8x128xf32> to vector<8x32xf32>
    %108 = vector.extract_strided_slice %104 {offsets = [0, 96], sizes = [8, 32], strides = [1, 1]} : vector<8x128xf32> to vector<8x32xf32>
    %109 = arith.mulf %106, %86 : vector<8x32xf32>
    %110 = arith.mulf %105, %107 : vector<8x32xf32>
    %111 = arith.addf %109, %110 : vector<8x32xf32>
    %112 = math.tanh %111 : vector<8x32xf32>
    %113 = arith.mulf %108, %112 : vector<8x32xf32>
    %114 = arith.index_cast %92 : i32 to index
    %c0_36 = arith.constant 0 : index
    %115 = vector.load %arg12[%114, %c0_36] : memref<64x32xf32, #tpu.memory_space<vmem>>, vector<8x32xf32>
    tpu.vector_store %arg12[%114, %c0_36], %113 {strides = array<i32>} : memref<64x32xf32, #tpu.memory_space<vmem>>, vector<8x32xf32>,
    %c4_i32 = arith.constant 4 : i32
    %c8_i32_37 = arith.constant 8 : i32
    %116 = arith.muli %c4_i32, %c8_i32_37 : i32
    %117 = tpu.assume_multiple %116, 8 : i32
    %118 = arith.index_cast %117 : i32 to index
    %c0_38 = arith.constant 0 : index
    %119 = vector.load %arg11[%118, %c0_38] : memref<64x128xf32, #tpu.memory_space<vmem>>, vector<8x128xf32>
    %c0_39 = arith.constant 0 : index
    %c0_40 = arith.constant 0 : index
    %120 = vector.load %arg3[%c0_39, %c0_40] : memref<32x128xf32, #tpu.memory_space<vmem>>, vector<32x128xf32>
    %cst_41 = arith.constant dense<0.000000e+00> : vector<8x128xf32>
    %121 = tpu.matmul %113, %120, %cst_41 {dimension_numbers = #tpu.dot_dimension_numbers<[1], [0], [0], [1], [0, 0, 1, 1], [], []>} : vector<8x32xf32>, vector<32x128xf32>, vector<8x128xf32> -> vector<8x128xf32>
    %122 = arith.addf %119, %121 : vector<8x128xf32>
    %123 = math.tanh %122 : vector<8x128xf32>
    %124 = arith.negf %122 : vector<8x128xf32>
    %125 = math.exp %124 : vector<8x128xf32>
    %cst_42 = arith.constant 1.000000e+00 : f32
    %126 = vector.broadcast %cst_42 : f32 to vector<8x128xf32>
    %127 = arith.addf %126, %125 : vector<8x128xf32>
    %128 = arith.divf %126, %127 : vector<8x128xf32>
    %129 = arith.select %5, %123, %128 : vector<8x128xi1>, vector<8x128xf32>
    %130 = vector.extract_strided_slice %129 {offsets = [0, 0], sizes = [8, 32], strides = [1, 1]} : vector<8x128xf32> to vector<8x32xf32>
    %131 = vector.extract_strided_slice %129 {offsets = [0, 32], sizes = [8, 32], strides = [1, 1]} : vector<8x128xf32> to vector<8x32xf32>
    %132 = vector.extract_strided_slice %129 {offsets = [0, 64], sizes = [8, 32], strides = [1, 1]} : vector<8x128xf32> to vector<8x32xf32>
    %133 = vector.extract_strided_slice %129 {offsets = [0, 96], sizes = [8, 32], strides = [1, 1]} : vector<8x128xf32> to vector<8x32xf32>
    %134 = arith.mulf %131, %111 : vector<8x32xf32>
    %135 = arith.mulf %130, %132 : vector<8x32xf32>
    %136 = arith.addf %134, %135 : vector<8x32xf32>
    %137 = math.tanh %136 : vector<8x32xf32>
    %138 = arith.mulf %133, %137 : vector<8x32xf32>
    %139 = arith.index_cast %117 : i32 to index
    %c0_43 = arith.constant 0 : index
    %140 = vector.load %arg12[%139, %c0_43] : memref<64x32xf32, #tpu.memory_space<vmem>>, vector<8x32xf32>
    tpu.vector_store %arg12[%139, %c0_43], %138 {strides = array<i32>} : memref<64x32xf32, #tpu.memory_space<vmem>>, vector<8x32xf32>,
    %c5_i32 = arith.constant 5 : i32
    %c8_i32_44 = arith.constant 8 : i32
    %141 = arith.muli %c5_i32, %c8_i32_44 : i32
    %142 = tpu.assume_multiple %141, 8 : i32
    %143 = arith.index_cast %142 : i32 to index
    %c0_45 = arith.constant 0 : index
    %144 = vector.load %arg11[%143, %c0_45] : memref<64x128xf32, #tpu.memory_space<vmem>>, vector<8x128xf32>
    %c0_46 = arith.constant 0 : index
    %c0_47 = arith.constant 0 : index
    %145 = vector.load %arg3[%c0_46, %c0_47] : memref<32x128xf32, #tpu.memory_space<vmem>>, vector<32x128xf32>
    %cst_48 = arith.constant dense<0.000000e+00> : vector<8x128xf32>
    %146 = tpu.matmul %138, %145, %cst_48 {dimension_numbers = #tpu.dot_dimension_numbers<[1], [0], [0], [1], [0, 0, 1, 1], [], []>} : vector<8x32xf32>, vector<32x128xf32>, vector<8x128xf32> -> vector<8x128xf32>
    %147 = arith.addf %144, %146 : vector<8x128xf32>
    %148 = math.tanh %147 : vector<8x128xf32>
    %149 = arith.negf %147 : vector<8x128xf32>
    %150 = math.exp %149 : vector<8x128xf32>
    %cst_49 = arith.constant 1.000000e+00 : f32
    %151 = vector.broadcast %cst_49 : f32 to vector<8x128xf32>
    %152 = arith.addf %151, %150 : vector<8x128xf32>
    %153 = arith.divf %151, %152 : vector<8x128xf32>
    %154 = arith.select %5, %148, %153 : vector<8x128xi1>, vector<8x128xf32>
    %155 = vector.extract_strided_slice %154 {offsets = [0, 0], sizes = [8, 32], strides = [1, 1]} : vector<8x128xf32> to vector<8x32xf32>
    %156 = vector.extract_strided_slice %154 {offsets = [0, 32], sizes = [8, 32], strides = [1, 1]} : vector<8x128xf32> to vector<8x32xf32>
    %157 = vector.extract_strided_slice %154 {offsets = [0, 64], sizes = [8, 32], strides = [1, 1]} : vector<8x128xf32> to vector<8x32xf32>
    %158 = vector.extract_strided_slice %154 {offsets = [0, 96], sizes = [8, 32], strides = [1, 1]} : vector<8x128xf32> to vector<8x32xf32>
    %159 = arith.mulf %156, %136 : vector<8x32xf32>
    %160 = arith.mulf %155, %157 : vector<8x32xf32>
    %161 = arith.addf %159, %160 : vector<8x32xf32>
    %162 = math.tanh %161 : vector<8x32xf32>
    %163 = arith.mulf %158, %162 : vector<8x32xf32>
    %164 = arith.index_cast %142 : i32 to index
    %c0_50 = arith.constant 0 : index
    %165 = vector.load %arg12[%164, %c0_50] : memref<64x32xf32, #tpu.memory_space<vmem>>, vector<8x32xf32>
    tpu.vector_store %arg12[%164, %c0_50], %163 {strides = array<i32>} : memref<64x32xf32, #tpu.memory_space<vmem>>, vector<8x32xf32>,
    %c6_i32 = arith.constant 6 : i32
    %c8_i32_51 = arith.constant 8 : i32
    %166 = arith.muli %c6_i32, %c8_i32_51 : i32
    %167 = tpu.assume_multiple %166, 8 : i32
    %168 = arith.index_cast %167 : i32 to index
    %c0_52 = arith.constant 0 : index
    %169 = vector.load %arg11[%168, %c0_52] : memref<64x128xf32, #tpu.memory_space<vmem>>, vector<8x128xf32>
    %c0_53 = arith.constant 0 : index
    %c0_54 = arith.constant 0 : index
    %170 = vector.load %arg3[%c0_53, %c0_54] : memref<32x128xf32, #tpu.memory_space<vmem>>, vector<32x128xf32>
    %cst_55 = arith.constant dense<0.000000e+00> : vector<8x128xf32>
    %171 = tpu.matmul %163, %170, %cst_55 {dimension_numbers = #tpu.dot_dimension_numbers<[1], [0], [0], [1], [0, 0, 1, 1], [], []>} : vector<8x32xf32>, vector<32x128xf32>, vector<8x128xf32> -> vector<8x128xf32>
    %172 = arith.addf %169, %171 : vector<8x128xf32>
    %173 = math.tanh %172 : vector<8x128xf32>
    %174 = arith.negf %172 : vector<8x128xf32>
    %175 = math.exp %174 : vector<8x128xf32>
    %cst_56 = arith.constant 1.000000e+00 : f32
    %176 = vector.broadcast %cst_56 : f32 to vector<8x128xf32>
    %177 = arith.addf %176, %175 : vector<8x128xf32>
    %178 = arith.divf %176, %177 : vector<8x128xf32>
    %179 = arith.select %5, %173, %178 : vector<8x128xi1>, vector<8x128xf32>
    %180 = vector.extract_strided_slice %179 {offsets = [0, 0], sizes = [8, 32], strides = [1, 1]} : vector<8x128xf32> to vector<8x32xf32>
    %181 = vector.extract_strided_slice %179 {offsets = [0, 32], sizes = [8, 32], strides = [1, 1]} : vector<8x128xf32> to vector<8x32xf32>
    %182 = vector.extract_strided_slice %179 {offsets = [0, 64], sizes = [8, 32], strides = [1, 1]} : vector<8x128xf32> to vector<8x32xf32>
    %183 = vector.extract_strided_slice %179 {offsets = [0, 96], sizes = [8, 32], strides = [1, 1]} : vector<8x128xf32> to vector<8x32xf32>
    %184 = arith.mulf %181, %161 : vector<8x32xf32>
    %185 = arith.mulf %180, %182 : vector<8x32xf32>
    %186 = arith.addf %184, %185 : vector<8x32xf32>
    %187 = math.tanh %186 : vector<8x32xf32>
    %188 = arith.mulf %183, %187 : vector<8x32xf32>
    %189 = arith.index_cast %167 : i32 to index
    %c0_57 = arith.constant 0 : index
    %190 = vector.load %arg12[%189, %c0_57] : memref<64x32xf32, #tpu.memory_space<vmem>>, vector<8x32xf32>
    tpu.vector_store %arg12[%189, %c0_57], %188 {strides = array<i32>} : memref<64x32xf32, #tpu.memory_space<vmem>>, vector<8x32xf32>,
    %c7_i32 = arith.constant 7 : i32
    %c8_i32_58 = arith.constant 8 : i32
    %191 = arith.muli %c7_i32, %c8_i32_58 : i32
    %192 = tpu.assume_multiple %191, 8 : i32
    %193 = arith.index_cast %192 : i32 to index
    %c0_59 = arith.constant 0 : index
    %194 = vector.load %arg11[%193, %c0_59] : memref<64x128xf32, #tpu.memory_space<vmem>>, vector<8x128xf32>
    %c0_60 = arith.constant 0 : index
    %c0_61 = arith.constant 0 : index
    %195 = vector.load %arg3[%c0_60, %c0_61] : memref<32x128xf32, #tpu.memory_space<vmem>>, vector<32x128xf32>
    %cst_62 = arith.constant dense<0.000000e+00> : vector<8x128xf32>
    %196 = tpu.matmul %188, %195, %cst_62 {dimension_numbers = #tpu.dot_dimension_numbers<[1], [0], [0], [1], [0, 0, 1, 1], [], []>} : vector<8x32xf32>, vector<32x128xf32>, vector<8x128xf32> -> vector<8x128xf32>
    %197 = arith.addf %194, %196 : vector<8x128xf32>
    %198 = math.tanh %197 : vector<8x128xf32>
    %199 = arith.negf %197 : vector<8x128xf32>
    %200 = math.exp %199 : vector<8x128xf32>
    %cst_63 = arith.constant 1.000000e+00 : f32
    %201 = vector.broadcast %cst_63 : f32 to vector<8x128xf32>
    %202 = arith.addf %201, %200 : vector<8x128xf32>
    %203 = arith.divf %201, %202 : vector<8x128xf32>
    %204 = arith.select %5, %198, %203 : vector<8x128xi1>, vector<8x128xf32>
    %205 = vector.extract_strided_slice %204 {offsets = [0, 0], sizes = [8, 32], strides = [1, 1]} : vector<8x128xf32> to vector<8x32xf32>
    %206 = vector.extract_strided_slice %204 {offsets = [0, 32], sizes = [8, 32], strides = [1, 1]} : vector<8x128xf32> to vector<8x32xf32>
    %207 = vector.extract_strided_slice %204 {offsets = [0, 64], sizes = [8, 32], strides = [1, 1]} : vector<8x128xf32> to vector<8x32xf32>
    %208 = vector.extract_strided_slice %204 {offsets = [0, 96], sizes = [8, 32], strides = [1, 1]} : vector<8x128xf32> to vector<8x32xf32>
    %209 = arith.mulf %206, %186 : vector<8x32xf32>
    %210 = arith.mulf %205, %207 : vector<8x32xf32>
    %211 = arith.addf %209, %210 : vector<8x32xf32>
    %212 = math.tanh %211 : vector<8x32xf32>
    %213 = arith.mulf %208, %212 : vector<8x32xf32>
    %214 = arith.index_cast %192 : i32 to index
    %c0_64 = arith.constant 0 : index
    %215 = vector.load %arg12[%214, %c0_64] : memref<64x32xf32, #tpu.memory_space<vmem>>, vector<8x32xf32>
    tpu.vector_store %arg12[%214, %c0_64], %213 {strides = array<i32>} : memref<64x32xf32, #tpu.memory_space<vmem>>, vector<8x32xf32>,
    %c8_i32_65 = arith.constant 8 : i32
    %c0_66 = arith.constant 0 : index
    %c0_67 = arith.constant 0 : index
    %216 = vector.load %arg12[%c0_66, %c0_67] : memref<64x32xf32, #tpu.memory_space<vmem>>, vector<64x32xf32>
    %c0_68 = arith.constant 0 : index
    %c0_69 = arith.constant 0 : index
    %217 = vector.load %arg5[%c0_68, %c0_69] : memref<32x128xf32, #tpu.memory_space<vmem>>, vector<32x128xf32>
    %cst_70 = arith.constant dense<0.000000e+00> : vector<64x128xf32>
    %218 = tpu.matmul %216, %217, %cst_70 {dimension_numbers = #tpu.dot_dimension_numbers<[1], [0], [0], [1], [0, 0, 1, 1], [], []>} : vector<64x32xf32>, vector<32x128xf32>, vector<64x128xf32> -> vector<64x128xf32>
    %c0_71 = arith.constant 0 : index
    %c0_72 = arith.constant 0 : index
    %219 = vector.load %arg7[%c0_71, %c0_72] : memref<1x128xf32, #tpu.memory_space<vmem>>, vector<1x128xf32>
    %220 = vector.broadcast %219 : vector<1x128xf32> to vector<64x128xf32>
    %221 = arith.addf %218, %220 : vector<64x128xf32>
    %c0_73 = arith.constant 0 : index
    %c0_74 = arith.constant 0 : index
    %222 = vector.load %arg11[%c0_73, %c0_74] : memref<64x128xf32, #tpu.memory_space<vmem>>, vector<64x128xf32>
    tpu.vector_store %arg11[%c0_73, %c0_74], %221 {strides = array<i32>} : memref<64x128xf32, #tpu.memory_space<vmem>>, vector<64x128xf32>,
    %cst_75 = arith.constant 0.000000e+00 : f32
    %223 = vector.broadcast %cst_75 : f32 to vector<8x32xf32>
    %cst_76 = arith.constant 0.000000e+00 : f32
    %224 = vector.broadcast %cst_76 : f32 to vector<8x32xf32>
    %c0_i32_77 = arith.constant 0 : i32
    %c8_i32_78 = arith.constant 8 : i32
    %225 = arith.muli %c0_i32_77, %c8_i32_78 : i32
    %226 = tpu.assume_multiple %225, 8 : i32
    %227 = arith.index_cast %226 : i32 to index
    %c0_79 = arith.constant 0 : index
    %228 = vector.load %arg11[%227, %c0_79] : memref<64x128xf32, #tpu.memory_space<vmem>>, vector<8x128xf32>
    %c0_80 = arith.constant 0 : index
    %c0_81 = arith.constant 0 : index
    %229 = vector.load %arg6[%c0_80, %c0_81] : memref<32x128xf32, #tpu.memory_space<vmem>>, vector<32x128xf32>
    %cst_82 = arith.constant dense<0.000000e+00> : vector<8x128xf32>
    %230 = tpu.matmul %223, %229, %cst_82 {dimension_numbers = #tpu.dot_dimension_numbers<[1], [0], [0], [1], [0, 0, 1, 1], [], []>} : vector<8x32xf32>, vector<32x128xf32>, vector<8x128xf32> -> vector<8x128xf32>
    %231 = arith.addf %228, %230 : vector<8x128xf32>
    %232 = math.tanh %231 : vector<8x128xf32>
    %233 = arith.negf %231 : vector<8x128xf32>
    %234 = math.exp %233 : vector<8x128xf32>
    %cst_83 = arith.constant 1.000000e+00 : f32
    %235 = vector.broadcast %cst_83 : f32 to vector<8x128xf32>
    %236 = arith.addf %235, %234 : vector<8x128xf32>
    %237 = arith.divf %235, %236 : vector<8x128xf32>
    %238 = arith.select %5, %232, %237 : vector<8x128xi1>, vector<8x128xf32>
    %239 = vector.extract_strided_slice %238 {offsets = [0, 0], sizes = [8, 32], strides = [1, 1]} : vector<8x128xf32> to vector<8x32xf32>
    %240 = vector.extract_strided_slice %238 {offsets = [0, 32], sizes = [8, 32], strides = [1, 1]} : vector<8x128xf32> to vector<8x32xf32>
    %241 = vector.extract_strided_slice %238 {offsets = [0, 64], sizes = [8, 32], strides = [1, 1]} : vector<8x128xf32> to vector<8x32xf32>
    %242 = vector.extract_strided_slice %238 {offsets = [0, 96], sizes = [8, 32], strides = [1, 1]} : vector<8x128xf32> to vector<8x32xf32>
    %243 = arith.mulf %240, %224 : vector<8x32xf32>
    %244 = arith.mulf %239, %241 : vector<8x32xf32>
    %245 = arith.addf %243, %244 : vector<8x32xf32>
    %246 = math.tanh %245 : vector<8x32xf32>
    %247 = arith.mulf %242, %246 : vector<8x32xf32>
    %c1_i32_84 = arith.constant 1 : i32
    %c8_i32_85 = arith.constant 8 : i32
    %248 = arith.muli %c1_i32_84, %c8_i32_85 : i32
    %249 = tpu.assume_multiple %248, 8 : i32
    %250 = arith.index_cast %249 : i32 to index
    %c0_86 = arith.constant 0 : index
    %251 = vector.load %arg11[%250, %c0_86] : memref<64x128xf32, #tpu.memory_space<vmem>>, vector<8x128xf32>
    %c0_87 = arith.constant 0 : index
    %c0_88 = arith.constant 0 : index
    %252 = vector.load %arg6[%c0_87, %c0_88] : memref<32x128xf32, #tpu.memory_space<vmem>>, vector<32x128xf32>
    %cst_89 = arith.constant dense<0.000000e+00> : vector<8x128xf32>
    %253 = tpu.matmul %247, %252, %cst_89 {dimension_numbers = #tpu.dot_dimension_numbers<[1], [0], [0], [1], [0, 0, 1, 1], [], []>} : vector<8x32xf32>, vector<32x128xf32>, vector<8x128xf32> -> vector<8x128xf32>
    %254 = arith.addf %251, %253 : vector<8x128xf32>
    %255 = math.tanh %254 : vector<8x128xf32>
    %256 = arith.negf %254 : vector<8x128xf32>
    %257 = math.exp %256 : vector<8x128xf32>
    %cst_90 = arith.constant 1.000000e+00 : f32
    %258 = vector.broadcast %cst_90 : f32 to vector<8x128xf32>
    %259 = arith.addf %258, %257 : vector<8x128xf32>
    %260 = arith.divf %258, %259 : vector<8x128xf32>
    %261 = arith.select %5, %255, %260 : vector<8x128xi1>, vector<8x128xf32>
    %262 = vector.extract_strided_slice %261 {offsets = [0, 0], sizes = [8, 32], strides = [1, 1]} : vector<8x128xf32> to vector<8x32xf32>
    %263 = vector.extract_strided_slice %261 {offsets = [0, 32], sizes = [8, 32], strides = [1, 1]} : vector<8x128xf32> to vector<8x32xf32>
    %264 = vector.extract_strided_slice %261 {offsets = [0, 64], sizes = [8, 32], strides = [1, 1]} : vector<8x128xf32> to vector<8x32xf32>
    %265 = vector.extract_strided_slice %261 {offsets = [0, 96], sizes = [8, 32], strides = [1, 1]} : vector<8x128xf32> to vector<8x32xf32>
    %266 = arith.mulf %263, %245 : vector<8x32xf32>
    %267 = arith.mulf %262, %264 : vector<8x32xf32>
    %268 = arith.addf %266, %267 : vector<8x32xf32>
    %269 = math.tanh %268 : vector<8x32xf32>
    %270 = arith.mulf %265, %269 : vector<8x32xf32>
    %c2_i32_91 = arith.constant 2 : i32
    %c8_i32_92 = arith.constant 8 : i32
    %271 = arith.muli %c2_i32_91, %c8_i32_92 : i32
    %272 = tpu.assume_multiple %271, 8 : i32
    %273 = arith.index_cast %272 : i32 to index
    %c0_93 = arith.constant 0 : index
    %274 = vector.load %arg11[%273, %c0_93] : memref<64x128xf32, #tpu.memory_space<vmem>>, vector<8x128xf32>
    %c0_94 = arith.constant 0 : index
    %c0_95 = arith.constant 0 : index
    %275 = vector.load %arg6[%c0_94, %c0_95] : memref<32x128xf32, #tpu.memory_space<vmem>>, vector<32x128xf32>
    %cst_96 = arith.constant dense<0.000000e+00> : vector<8x128xf32>
    %276 = tpu.matmul %270, %275, %cst_96 {dimension_numbers = #tpu.dot_dimension_numbers<[1], [0], [0], [1], [0, 0, 1, 1], [], []>} : vector<8x32xf32>, vector<32x128xf32>, vector<8x128xf32> -> vector<8x128xf32>
    %277 = arith.addf %274, %276 : vector<8x128xf32>
    %278 = math.tanh %277 : vector<8x128xf32>
    %279 = arith.negf %277 : vector<8x128xf32>
    %280 = math.exp %279 : vector<8x128xf32>
    %cst_97 = arith.constant 1.000000e+00 : f32
    %281 = vector.broadcast %cst_97 : f32 to vector<8x128xf32>
    %282 = arith.addf %281, %280 : vector<8x128xf32>
    %283 = arith.divf %281, %282 : vector<8x128xf32>
    %284 = arith.select %5, %278, %283 : vector<8x128xi1>, vector<8x128xf32>
    %285 = vector.extract_strided_slice %284 {offsets = [0, 0], sizes = [8, 32], strides = [1, 1]} : vector<8x128xf32> to vector<8x32xf32>
    %286 = vector.extract_strided_slice %284 {offsets = [0, 32], sizes = [8, 32], strides = [1, 1]} : vector<8x128xf32> to vector<8x32xf32>
    %287 = vector.extract_strided_slice %284 {offsets = [0, 64], sizes = [8, 32], strides = [1, 1]} : vector<8x128xf32> to vector<8x32xf32>
    %288 = vector.extract_strided_slice %284 {offsets = [0, 96], sizes = [8, 32], strides = [1, 1]} : vector<8x128xf32> to vector<8x32xf32>
    %289 = arith.mulf %286, %268 : vector<8x32xf32>
    %290 = arith.mulf %285, %287 : vector<8x32xf32>
    %291 = arith.addf %289, %290 : vector<8x32xf32>
    %292 = math.tanh %291 : vector<8x32xf32>
    %293 = arith.mulf %288, %292 : vector<8x32xf32>
    %c3_i32_98 = arith.constant 3 : i32
    %c8_i32_99 = arith.constant 8 : i32
    %294 = arith.muli %c3_i32_98, %c8_i32_99 : i32
    %295 = tpu.assume_multiple %294, 8 : i32
    %296 = arith.index_cast %295 : i32 to index
    %c0_100 = arith.constant 0 : index
    %297 = vector.load %arg11[%296, %c0_100] : memref<64x128xf32, #tpu.memory_space<vmem>>, vector<8x128xf32>
    %c0_101 = arith.constant 0 : index
    %c0_102 = arith.constant 0 : index
    %298 = vector.load %arg6[%c0_101, %c0_102] : memref<32x128xf32, #tpu.memory_space<vmem>>, vector<32x128xf32>
    %cst_103 = arith.constant dense<0.000000e+00> : vector<8x128xf32>
    %299 = tpu.matmul %293, %298, %cst_103 {dimension_numbers = #tpu.dot_dimension_numbers<[1], [0], [0], [1], [0, 0, 1, 1], [], []>} : vector<8x32xf32>, vector<32x128xf32>, vector<8x128xf32> -> vector<8x128xf32>
    %300 = arith.addf %297, %299 : vector<8x128xf32>
    %301 = math.tanh %300 : vector<8x128xf32>
    %302 = arith.negf %300 : vector<8x128xf32>
    %303 = math.exp %302 : vector<8x128xf32>
    %cst_104 = arith.constant 1.000000e+00 : f32
    %304 = vector.broadcast %cst_104 : f32 to vector<8x128xf32>
    %305 = arith.addf %304, %303 : vector<8x128xf32>
    %306 = arith.divf %304, %305 : vector<8x128xf32>
    %307 = arith.select %5, %301, %306 : vector<8x128xi1>, vector<8x128xf32>
    %308 = vector.extract_strided_slice %307 {offsets = [0, 0], sizes = [8, 32], strides = [1, 1]} : vector<8x128xf32> to vector<8x32xf32>
    %309 = vector.extract_strided_slice %307 {offsets = [0, 32], sizes = [8, 32], strides = [1, 1]} : vector<8x128xf32> to vector<8x32xf32>
    %310 = vector.extract_strided_slice %307 {offsets = [0, 64], sizes = [8, 32], strides = [1, 1]} : vector<8x128xf32> to vector<8x32xf32>
    %311 = vector.extract_strided_slice %307 {offsets = [0, 96], sizes = [8, 32], strides = [1, 1]} : vector<8x128xf32> to vector<8x32xf32>
    %312 = arith.mulf %309, %291 : vector<8x32xf32>
    %313 = arith.mulf %308, %310 : vector<8x32xf32>
    %314 = arith.addf %312, %313 : vector<8x32xf32>
    %315 = math.tanh %314 : vector<8x32xf32>
    %316 = arith.mulf %311, %315 : vector<8x32xf32>
    %c4_i32_105 = arith.constant 4 : i32
    %c8_i32_106 = arith.constant 8 : i32
    %317 = arith.muli %c4_i32_105, %c8_i32_106 : i32
    %318 = tpu.assume_multiple %317, 8 : i32
    %319 = arith.index_cast %318 : i32 to index
    %c0_107 = arith.constant 0 : index
    %320 = vector.load %arg11[%319, %c0_107] : memref<64x128xf32, #tpu.memory_space<vmem>>, vector<8x128xf32>
    %c0_108 = arith.constant 0 : index
    %c0_109 = arith.constant 0 : index
    %321 = vector.load %arg6[%c0_108, %c0_109] : memref<32x128xf32, #tpu.memory_space<vmem>>, vector<32x128xf32>
    %cst_110 = arith.constant dense<0.000000e+00> : vector<8x128xf32>
    %322 = tpu.matmul %316, %321, %cst_110 {dimension_numbers = #tpu.dot_dimension_numbers<[1], [0], [0], [1], [0, 0, 1, 1], [], []>} : vector<8x32xf32>, vector<32x128xf32>, vector<8x128xf32> -> vector<8x128xf32>
    %323 = arith.addf %320, %322 : vector<8x128xf32>
    %324 = math.tanh %323 : vector<8x128xf32>
    %325 = arith.negf %323 : vector<8x128xf32>
    %326 = math.exp %325 : vector<8x128xf32>
    %cst_111 = arith.constant 1.000000e+00 : f32
    %327 = vector.broadcast %cst_111 : f32 to vector<8x128xf32>
    %328 = arith.addf %327, %326 : vector<8x128xf32>
    %329 = arith.divf %327, %328 : vector<8x128xf32>
    %330 = arith.select %5, %324, %329 : vector<8x128xi1>, vector<8x128xf32>
    %331 = vector.extract_strided_slice %330 {offsets = [0, 0], sizes = [8, 32], strides = [1, 1]} : vector<8x128xf32> to vector<8x32xf32>
    %332 = vector.extract_strided_slice %330 {offsets = [0, 32], sizes = [8, 32], strides = [1, 1]} : vector<8x128xf32> to vector<8x32xf32>
    %333 = vector.extract_strided_slice %330 {offsets = [0, 64], sizes = [8, 32], strides = [1, 1]} : vector<8x128xf32> to vector<8x32xf32>
    %334 = vector.extract_strided_slice %330 {offsets = [0, 96], sizes = [8, 32], strides = [1, 1]} : vector<8x128xf32> to vector<8x32xf32>
    %335 = arith.mulf %332, %314 : vector<8x32xf32>
    %336 = arith.mulf %331, %333 : vector<8x32xf32>
    %337 = arith.addf %335, %336 : vector<8x32xf32>
    %338 = math.tanh %337 : vector<8x32xf32>
    %339 = arith.mulf %334, %338 : vector<8x32xf32>
    %c5_i32_112 = arith.constant 5 : i32
    %c8_i32_113 = arith.constant 8 : i32
    %340 = arith.muli %c5_i32_112, %c8_i32_113 : i32
    %341 = tpu.assume_multiple %340, 8 : i32
    %342 = arith.index_cast %341 : i32 to index
    %c0_114 = arith.constant 0 : index
    %343 = vector.load %arg11[%342, %c0_114] : memref<64x128xf32, #tpu.memory_space<vmem>>, vector<8x128xf32>
    %c0_115 = arith.constant 0 : index
    %c0_116 = arith.constant 0 : index
    %344 = vector.load %arg6[%c0_115, %c0_116] : memref<32x128xf32, #tpu.memory_space<vmem>>, vector<32x128xf32>
    %cst_117 = arith.constant dense<0.000000e+00> : vector<8x128xf32>
    %345 = tpu.matmul %339, %344, %cst_117 {dimension_numbers = #tpu.dot_dimension_numbers<[1], [0], [0], [1], [0, 0, 1, 1], [], []>} : vector<8x32xf32>, vector<32x128xf32>, vector<8x128xf32> -> vector<8x128xf32>
    %346 = arith.addf %343, %345 : vector<8x128xf32>
    %347 = math.tanh %346 : vector<8x128xf32>
    %348 = arith.negf %346 : vector<8x128xf32>
    %349 = math.exp %348 : vector<8x128xf32>
    %cst_118 = arith.constant 1.000000e+00 : f32
    %350 = vector.broadcast %cst_118 : f32 to vector<8x128xf32>
    %351 = arith.addf %350, %349 : vector<8x128xf32>
    %352 = arith.divf %350, %351 : vector<8x128xf32>
    %353 = arith.select %5, %347, %352 : vector<8x128xi1>, vector<8x128xf32>
    %354 = vector.extract_strided_slice %353 {offsets = [0, 0], sizes = [8, 32], strides = [1, 1]} : vector<8x128xf32> to vector<8x32xf32>
    %355 = vector.extract_strided_slice %353 {offsets = [0, 32], sizes = [8, 32], strides = [1, 1]} : vector<8x128xf32> to vector<8x32xf32>
    %356 = vector.extract_strided_slice %353 {offsets = [0, 64], sizes = [8, 32], strides = [1, 1]} : vector<8x128xf32> to vector<8x32xf32>
    %357 = vector.extract_strided_slice %353 {offsets = [0, 96], sizes = [8, 32], strides = [1, 1]} : vector<8x128xf32> to vector<8x32xf32>
    %358 = arith.mulf %355, %337 : vector<8x32xf32>
    %359 = arith.mulf %354, %356 : vector<8x32xf32>
    %360 = arith.addf %358, %359 : vector<8x32xf32>
    %361 = math.tanh %360 : vector<8x32xf32>
    %362 = arith.mulf %357, %361 : vector<8x32xf32>
    %c6_i32_119 = arith.constant 6 : i32
    %c8_i32_120 = arith.constant 8 : i32
    %363 = arith.muli %c6_i32_119, %c8_i32_120 : i32
    %364 = tpu.assume_multiple %363, 8 : i32
    %365 = arith.index_cast %364 : i32 to index
    %c0_121 = arith.constant 0 : index
    %366 = vector.load %arg11[%365, %c0_121] : memref<64x128xf32, #tpu.memory_space<vmem>>, vector<8x128xf32>
    %c0_122 = arith.constant 0 : index
    %c0_123 = arith.constant 0 : index
    %367 = vector.load %arg6[%c0_122, %c0_123] : memref<32x128xf32, #tpu.memory_space<vmem>>, vector<32x128xf32>
    %cst_124 = arith.constant dense<0.000000e+00> : vector<8x128xf32>
    %368 = tpu.matmul %362, %367, %cst_124 {dimension_numbers = #tpu.dot_dimension_numbers<[1], [0], [0], [1], [0, 0, 1, 1], [], []>} : vector<8x32xf32>, vector<32x128xf32>, vector<8x128xf32> -> vector<8x128xf32>
    %369 = arith.addf %366, %368 : vector<8x128xf32>
    %370 = math.tanh %369 : vector<8x128xf32>
    %371 = arith.negf %369 : vector<8x128xf32>
    %372 = math.exp %371 : vector<8x128xf32>
    %cst_125 = arith.constant 1.000000e+00 : f32
    %373 = vector.broadcast %cst_125 : f32 to vector<8x128xf32>
    %374 = arith.addf %373, %372 : vector<8x128xf32>
    %375 = arith.divf %373, %374 : vector<8x128xf32>
    %376 = arith.select %5, %370, %375 : vector<8x128xi1>, vector<8x128xf32>
    %377 = vector.extract_strided_slice %376 {offsets = [0, 0], sizes = [8, 32], strides = [1, 1]} : vector<8x128xf32> to vector<8x32xf32>
    %378 = vector.extract_strided_slice %376 {offsets = [0, 32], sizes = [8, 32], strides = [1, 1]} : vector<8x128xf32> to vector<8x32xf32>
    %379 = vector.extract_strided_slice %376 {offsets = [0, 64], sizes = [8, 32], strides = [1, 1]} : vector<8x128xf32> to vector<8x32xf32>
    %380 = vector.extract_strided_slice %376 {offsets = [0, 96], sizes = [8, 32], strides = [1, 1]} : vector<8x128xf32> to vector<8x32xf32>
    %381 = arith.mulf %378, %360 : vector<8x32xf32>
    %382 = arith.mulf %377, %379 : vector<8x32xf32>
    %383 = arith.addf %381, %382 : vector<8x32xf32>
    %384 = math.tanh %383 : vector<8x32xf32>
    %385 = arith.mulf %380, %384 : vector<8x32xf32>
    %c7_i32_126 = arith.constant 7 : i32
    %c8_i32_127 = arith.constant 8 : i32
    %386 = arith.muli %c7_i32_126, %c8_i32_127 : i32
    %387 = tpu.assume_multiple %386, 8 : i32
    %388 = arith.index_cast %387 : i32 to index
    %c0_128 = arith.constant 0 : index
    %389 = vector.load %arg11[%388, %c0_128] : memref<64x128xf32, #tpu.memory_space<vmem>>, vector<8x128xf32>
    %c0_129 = arith.constant 0 : index
    %c0_130 = arith.constant 0 : index
    %390 = vector.load %arg6[%c0_129, %c0_130] : memref<32x128xf32, #tpu.memory_space<vmem>>, vector<32x128xf32>
    %cst_131 = arith.constant dense<0.000000e+00> : vector<8x128xf32>
    %391 = tpu.matmul %385, %390, %cst_131 {dimension_numbers = #tpu.dot_dimension_numbers<[1], [0], [0], [1], [0, 0, 1, 1], [], []>} : vector<8x32xf32>, vector<32x128xf32>, vector<8x128xf32> -> vector<8x128xf32>
    %392 = arith.addf %389, %391 : vector<8x128xf32>
    %393 = math.tanh %392 : vector<8x128xf32>
    %394 = arith.negf %392 : vector<8x128xf32>
    %395 = math.exp %394 : vector<8x128xf32>
    %cst_132 = arith.constant 1.000000e+00 : f32
    %396 = vector.broadcast %cst_132 : f32 to vector<8x128xf32>
    %397 = arith.addf %396, %395 : vector<8x128xf32>
    %398 = arith.divf %396, %397 : vector<8x128xf32>
    %399 = arith.select %5, %393, %398 : vector<8x128xi1>, vector<8x128xf32>
    %400 = vector.extract_strided_slice %399 {offsets = [0, 0], sizes = [8, 32], strides = [1, 1]} : vector<8x128xf32> to vector<8x32xf32>
    %401 = vector.extract_strided_slice %399 {offsets = [0, 32], sizes = [8, 32], strides = [1, 1]} : vector<8x128xf32> to vector<8x32xf32>
    %402 = vector.extract_strided_slice %399 {offsets = [0, 64], sizes = [8, 32], strides = [1, 1]} : vector<8x128xf32> to vector<8x32xf32>
    %403 = vector.extract_strided_slice %399 {offsets = [0, 96], sizes = [8, 32], strides = [1, 1]} : vector<8x128xf32> to vector<8x32xf32>
    %404 = arith.mulf %401, %383 : vector<8x32xf32>
    %405 = arith.mulf %400, %402 : vector<8x32xf32>
    %406 = arith.addf %404, %405 : vector<8x32xf32>
    %407 = math.tanh %406 : vector<8x32xf32>
    %408 = arith.mulf %403, %407 : vector<8x32xf32>
    %c8_i32_133 = arith.constant 8 : i32
    %c0_134 = arith.constant 0 : index
    %c0_135 = arith.constant 0 : index
    %409 = vector.load %arg8[%c0_134, %c0_135] : memref<32x128xf32, #tpu.memory_space<vmem>>, vector<32x128xf32>
    %cst_136 = arith.constant dense<0.000000e+00> : vector<8x128xf32>
    %410 = tpu.matmul %408, %409, %cst_136 {dimension_numbers = #tpu.dot_dimension_numbers<[1], [0], [0], [1], [0, 0, 1, 1], [], []>} : vector<8x32xf32>, vector<32x128xf32>, vector<8x128xf32> -> vector<8x128xf32>
    %c0_137 = arith.constant 0 : index
    %c0_138 = arith.constant 0 : index
    %411 = vector.load %arg9[%c0_137, %c0_138] : memref<1x128xf32, #tpu.memory_space<vmem>>, vector<1x128xf32>
    %412 = vector.broadcast %411 : vector<1x128xf32> to vector<8x128xf32>
    %413 = arith.addf %410, %412 : vector<8x128xf32>
    %414 = arith.negf %413 : vector<8x128xf32>
    %415 = math.exp %414 : vector<8x128xf32>
    %cst_139 = arith.constant 1.000000e+00 : f32
    %416 = vector.broadcast %cst_139 : f32 to vector<8x128xf32>
    %417 = arith.addf %416, %415 : vector<8x128xf32>
    %418 = arith.divf %416, %417 : vector<8x128xf32>
    %c0_140 = arith.constant 0 : index
    %c0_141 = arith.constant 0 : index
    %c0_142 = arith.constant 0 : index
    %419 = vector.load %arg10[%c0_140, %c0_141, %c0_142] : memref<1x8x128xf32, #tpu.memory_space<vmem>>, vector<1x8x128xf32>
    %420 = vector.shape_cast %419 : vector<1x8x128xf32> to vector<8x128xf32>
    %421 = vector.shape_cast %418 : vector<8x128xf32> to vector<1x8x128xf32>
    tpu.vector_store %arg10[%c0_140, %c0_141, %c0_142], %421 {strides = array<i32>} : memref<1x8x128xf32, #tpu.memory_space<vmem>>, vector<1x8x128xf32>,
    return
  }
  func.func @transform_0(%arg0: i32) -> (i32, i32, i32) {
    %c0_i32 = arith.constant 0 : i32
    %c0_i32_0 = arith.constant 0 : i32
    %c0_i32_1 = arith.constant 0 : i32
    return %arg0, %c0_i32, %c0_i32_0 : i32, i32, i32
  }
  func.func @transform_1(%arg0: i32) -> (i32, i32) {
    %c0_i32 = arith.constant 0 : i32
    %c0_i32_0 = arith.constant 0 : i32
    %c0_i32_1 = arith.constant 0 : i32
    return %c0_i32, %c0_i32_0 : i32, i32
  }
  func.func @transform_2(%arg0: i32) -> (i32, i32) {
    %c0_i32 = arith.constant 0 : i32
    %c0_i32_0 = arith.constant 0 : i32
    %c0_i32_1 = arith.constant 0 : i32
    return %c0_i32, %c0_i32_0 : i32, i32
  }
  func.func @transform_3(%arg0: i32) -> (i32, i32) {
    %c0_i32 = arith.constant 0 : i32
    %c0_i32_0 = arith.constant 0 : i32
    %c0_i32_1 = arith.constant 0 : i32
    return %c0_i32, %c0_i32_0 : i32, i32
  }
  func.func @transform_4(%arg0: i32) -> (i32, i32) {
    %c0_i32 = arith.constant 0 : i32
    %c0_i32_0 = arith.constant 0 : i32
    %c0_i32_1 = arith.constant 0 : i32
    return %c0_i32, %c0_i32_0 : i32, i32
  }
  func.func @transform_5(%arg0: i32) -> (i32, i32) {
    %c0_i32 = arith.constant 0 : i32
    %c0_i32_0 = arith.constant 0 : i32
    %c0_i32_1 = arith.constant 0 : i32
    return %c0_i32, %c0_i32_0 : i32, i32
  }
  func.func @transform_6(%arg0: i32) -> (i32, i32) {
    %c0_i32 = arith.constant 0 : i32
    %c0_i32_0 = arith.constant 0 : i32
    %c0_i32_1 = arith.constant 0 : i32
    return %c0_i32, %c0_i32_0 : i32, i32
  }
  func.func @transform_7(%arg0: i32) -> (i32, i32) {
    %c0_i32 = arith.constant 0 : i32
    %c0_i32_0 = arith.constant 0 : i32
    %c0_i32_1 = arith.constant 0 : i32
    return %c0_i32, %c0_i32_0 : i32, i32
  }
  func.func @transform_8(%arg0: i32) -> (i32, i32) {
    %c0_i32 = arith.constant 0 : i32
    %c0_i32_0 = arith.constant 0 : i32
    %c0_i32_1 = arith.constant 0 : i32
    return %c0_i32, %c0_i32_0 : i32, i32
  }
  func.func @transform_9(%arg0: i32) -> (i32, i32, i32) {
    %c0_i32 = arith.constant 0 : i32
    %c0_i32_0 = arith.constant 0 : i32
    %c0_i32_1 = arith.constant 0 : i32
    return %arg0, %c0_i32, %c0_i32_0 : i32, i32, i32
  }
}

</mosaic_0001>

<bundles_post_ra>
// kernel: lst_model_forward.1
= control target key start
LH: loop header
LB: loop body
LE: loop exit
PB: predicated region body
PF: predicated region fallthrough
CT: control target
= control target key end

     0   :  { %vm78_vm0 = vcmask 1043456   ;;  %vm53_vm1 = vcmask 31744   ;;  %v2769_v0 = vmov 0.0|0.0   ;;  %vm2770_vm2 = vmmov 0   ;;  %s2773_s23 = smov 32   ;;  %s3219_s2 = inlined_call_operand.vmem [shape: f32[32,128], index: 2, kind: input, shape index: {}]   ;;  %s3220_s1 = inlined_call_operand.vmem [shape: f32[4,128], index: 1, kind: input, shape index: {}]   ;;  %s3221_s0 = inlined_call_operand.vmem [shape: f32[1,64,4], index: 0, kind: input, shape index: {}]   ;;  %s3222_s3 = inlined_call_operand.vmem [shape: f32[1,128], index: 3, kind: input, shape index: {}]   ;;  %s3223_s4 = inlined_call_operand.vmem [shape: f32[32,128], index: 4, kind: input, shape index: {}]   ;;  %s3224_s5 = inlined_call_operand.vmem [shape: f32[32,128], index: 5, kind: input, shape index: {}]   ;;  %s3225_s6 = inlined_call_operand.vmem [shape: f32[1,128], index: 6, kind: input, shape index: {}]   ;;  %s3226_s7 = inlined_call_operand.vmem [shape: f32[32,128], index: 7, kind: input, shape index: {}]   ;;  %s3227_s8 = inlined_call_operand.vmem [shape: f32[1,128], index: 8, kind: input, shape index: {}]   ;;  %s3228_s9 = inlined_call_operand.vmem [shape: f32[1,8,128], index: 9, kind: output, shape index: {}]  }
   0x1   :  { %2522 = vmatprep.subr.bf16.mxu1 %v2769_v0  ;;  %v196_v1 = vld [vmem:[%s3219_s2] sm:$0xff]  ;;  %v197_v2 = vld [vmem:[%s3219_s2 + $0x8] sm:$0xff]  ;;  %v198_v7 = vld [vmem:[%s3219_s2 + $0x10] sm:$0xff]  ;;  %v2771_v8 = vmov 0.0   ;;  %v32_v20 = vlaneseq  ;;  %vm200_vm6 = vcmask 261120  }
   0x2   :  { %v45_v3 = vld [vmem:[%s3220_s1] sm:$0xf]  ;;  %v2834_v4 = vpack.c.bf16 %v197_v2, %v196_v1  ;;  %v38_v6 = vld [vmem:[%s3221_s0 + $0x8] sm:$0xff]  ;;  %2323 = vmatprep.mubr.msk.f32.mxu1 %vm2770_vm2, %v2771_v8  ;;  %v199_v9 = vld [vmem:[%s3219_s2 + $0x18] sm:$0xff] }
   0x3   :  { %2301 = vmatprep.subr.msk.mxu0 %vm78_vm0, %v45_v3  ;;  %v37_v5 = vld [vmem:[%s3221_s0] sm:$0xff]  ;;  %v2855_v10 = vpack.c.bf16 %v199_v9, %v198_v7  ;;  %v33_v22 = vand.u32 127, %v32_v20  ;;  %v39_v51 = vld [vmem:[%s3221_s0 + $0x10] sm:$0xff]  ;;  %v40_v52 = vld [vmem:[%s3221_s0 + $0x18] sm:$0xff] }
   0x4   :  { %2302 = vmatpush3.msk.msra.mxu0 %vm78_vm0, %v45_v3  ;;  %2303 = vmatprep.mubr.msk.f32.mxu0 %vm53_vm1, %v37_v5  ;;  %v2875_v12 = vld [vmem:[%s3222_s3] ss:$0 sm:$0xff]  ;;  %s2772_s3 = smov 64   ;;  %v42_v54 = vld [vmem:[%s3221_s0 + $0x28] sm:$0xff]  ;;  %v43_v55 = vld [vmem:[%s3221_s0 + $0x30] sm:$0xff] }
   0x5   :  { %2524 = vmatpush3.bf16.msra.mxu1 %v2834_v4  ;;  %2304 = vmatmul.mubr.msk.f32.vlgmr.msra.gmra.mrb[0].mxu0 %vm53_vm1, %v38_v6  ;;  %vm34_vm3 = vcmp.ge.s32.totalorder %v33_v22, 64  ;;  %vm35_vm4 = vcmp.lt.s32.totalorder %v33_v22, 96  ;;  %v41_v53 = vld [vmem:[%s3221_s0 + $0x20] sm:$0xff]  ;;  %v44_v56 = vld [vmem:[%s3221_s0 + $0x38] sm:$0xff]  ;;  %v2048_v23 = vld [vmem:[%s3226_s7 + $0x10] sm:$0xff] }
   0x6   :  { %2525 = vmatprep.subr.bf16.mxu1 %v2769_v0  ;;  %2534 = vmatprep.subr.bf16.mxu0 %v2769_v0  ;;  %vm2878_vm5 = vmand %vm34_vm3, %vm35_vm4 }
   0x7   :  { %2536 = vmatpush3.bf16.msra.mxu0 %v2834_v4  ;;  %2306 = vmatprep.mubr.msk.f32.mxu0 %vm53_vm1, %v39_v51 }
   0x8   :  { %2537 = vmatprep.subr.bf16.mxu0 %v2769_v0 }
   0x9   :  { %2527 = vmatpush3.bf16.msra.mxu1 %v2855_v10  ;;  %2307 = vmatmul.mubr.msk.f32.gmra.mrb[2].mxu0 %vm53_vm1, %v40_v52 }
   0xa   :  { %2528 = vmatprep.subr.bf16.mxu1 %v2769_v0  ;;  %2309 = vmatprep.mubr.msk.f32.mxu0 %vm53_vm1, %v41_v53 }
   0xb   :  { %2539 = vmatpush3.bf16.msra.mxu0 %v2855_v10 }
   0xc   :  { %2324 = vmatmul.mubr.f32.vlgmr.msra.gmra.mrb[0].mxu1 %v2771_v8  ;;  %2546 = vmatprep.subr.bf16.mxu0 %v2769_v0 }
   0xd   :  { %2530 = vmatpush3.bf16.msra.mxu1 %v2834_v4  ;;  %2334 = vmatprep.mubr.msk.f32.mxu1 %vm2770_vm2, %v2771_v8 }
   0xe   :  { %2531 = vmatprep.subr.bf16.mxu1 %v2769_v0  ;;  %2310 = vmatmul.mubr.msk.f32.gmra.mrb[4].mxu0 %vm53_vm1, %v42_v54 }
   0xf   :  { %2312 = vmatprep.mubr.msk.f32.mxu0 %vm53_vm1, %v43_v55 }
  0x11   :  { %2533 = vmatpush3.bf16.msra.mxu1 %v2855_v10 }
  0x12   :  { %2540 = vmatprep.subr.bf16.mxu1 %v2769_v0  ;;  %2313 = vmatmul.mubr.msk.f32.gmra.mrb[6].mxu0 %vm53_vm1, %v44_v56 }
  0x13   :  { %2345 = vmatprep.mubr.msk.f32.mxu0 %vm2770_vm2, %v2771_v8 }
  0xd8   :  { %v2305_v11 = vpop.f32.mrb[0].mxu0 }
  0xd9   :  { %v148_v13 = vpop.f32.mrb[1].mxu0  ;;  %v154_v36 = vadd.f32 %v2305_v11, %v2875_v12 }
  0xda   :  { %v149_v14 = vadd.f32 %v2875_v12, %v148_v13 }
  0xdc   :  { %v2308_v60 = vpop.f32.mrb[2].mxu0 }
  0xdd   :  { %v158_v61 = vpop.f32.mrb[3].mxu0 }
  0xde   :  { %v159_v5 = vadd.f32 %v2875_v12, %v158_v61 }
  0xdf   :  { %v270_v15 = vpop.f32.mrb[0].mxu1 }
  0xe0   :  { %v274_v16 = vadd.f32 %v270_v15, %v149_v14  ;;  %v2325_v17 = vpop.f32.mrb[1].mxu1 }
  0xe1   :  { %v2929_v62 = vpop.f32.mrb[4].mxu0 }
  0xe2   :  { %v2153_v18 = vmul.f32 -1.442695, %v274_v16  ;;  %v2931_v63 = vpop.f32.mrb[5].mxu0 }
  0xe4   :  { %2637 = vpow2.f32 %v2153_v18 }
  0xe5   :  { %2639 = vtanh.f32 %v274_v16  ;;  %v2933_v1 = vpop.f32.mrb[6].mxu0 }
  0xe6   :  { %v2935_v2 = vpop.f32.mrb[7].mxu0 }
  0xee   :  { %v2638_v19 = vpop.eup %2637 }
  0xef   :  { %v279_v21 = vadd.f32 1.0, %v2638_v19  ;;  %v2640_v24 = vpop.eup %2639 }
  0xf1   :  { %2641 = vrcp.f32 %v279_v21 }
  0xfb   :  { %v2642_v25 = vpop.eup %2641 }
  0xfc   :  { %v282_v26 = vsel %vm2878_vm5, %v2640_v24, %v2642_v25 }
  0xfd   :  { %285 = vrot.lane.b32.xlu0 %v282_v26, %s2772_s3  ;;  %v283_v29 = vmul.f32 0.0, %v282_v26 }
 0x16f   :  { %v286_v27 = vpop.permute.xlu0 %285 }
 0x170   :  { %v288_v28 = vmul.f32 %v286_v27, %v282_v26 }
 0x172   :  { %290 = vrot.lane.b32.xlu0 %v288_v28, %s2773_s23  ;;  %v164_v28 = vadd.f32 %v2308_v60, %v2875_v12 }
 0x1e4   :  { %v291_v30 = vpop.permute.xlu0 %290 }
 0x1e5   :  { %v293_v31 = vadd.f32 %v291_v30, %v283_v29 }
 0x1e7   :  { %2643 = vtanh.f32 %v293_v31 }
 0x1f1   :  { %v2644_v32 = vpop.eup %2643 }
 0x1f2   :  { %296 = vrot.lane.b32.xlu1 %v2644_v32, %s2772_s3 }
 0x264   :  { %v297_v33 = vpop.permute.xlu1 %296 }
 0x265   :  { %v299_v34 = vmul.f32 %v297_v33, %v282_v26 }
 0x267   :  { %301 = vrot.lane.b32.xlu1 %v299_v34, %s2773_s23 }
 0x2d9   :  { %v302_v35 = vpop.permute.xlu1 %301 }
 0x2da   :  { %304 = vst.msk [vmem:[#allocation3] sm:$0xff] %vm200_vm6, %v302_v35  ;;  %2335 = vmatmul.mubr.msk.f32.vlgmr.msra.gmra.mrb[2].mxu1 %vm200_vm6, %v302_v35 }
 0x2db   :  { %2542 = vmatpush3.bf16.msra.mxu1 %v2834_v4  ;;  %2356 = vmatprep.mubr.msk.f32.mxu1 %vm2770_vm2, %v2771_v8 }
 0x2dc   :  { %2543 = vmatprep.subr.bf16.mxu1 %v2769_v0 }
 0x2df   :  { %2545 = vmatpush3.bf16.msra.mxu1 %v2855_v10 }
 0x2e0   :  { %2552 = vmatprep.subr.bf16.mxu1 %v2769_v0 }
 0x3ad   :  { %v379_v37 = vpop.f32.mrb[2].mxu1 }
 0x3ae   :  { %v383_v38 = vadd.f32 %v379_v37, %v154_v36  ;;  %v2336_v39 = vpop.f32.mrb[3].mxu1 }
 0x3b0   :  { %v2155_v40 = vmul.f32 -1.442695, %v383_v38 }
 0x3b2   :  { %2645 = vpow2.f32 %v2155_v40 }
 0x3b3   :  { %2647 = vtanh.f32 %v383_v38 }
 0x3bc   :  { %v2646_v41 = vpop.eup %2645 }
 0x3bd   :  { %v388_v42 = vadd.f32 1.0, %v2646_v41  ;;  %v2648_v43 = vpop.eup %2647 }
 0x3bf   :  { %2649 = vrcp.f32 %v388_v42 }
 0x3c9   :  { %v2650_v44 = vpop.eup %2649 }
 0x3ca   :  { %v391_v45 = vsel %vm2878_vm5, %v2648_v43, %v2650_v44 }
 0x3cb   :  { %394 = vrot.lane.b32.xlu0 %v391_v45, %s2772_s3  ;;  %v392_v48 = vmul.f32 %v391_v45, %v293_v31 }
 0x43d   :  { %v395_v46 = vpop.permute.xlu0 %394 }
 0x43e   :  { %v397_v47 = vmul.f32 %v395_v46, %v391_v45 }
 0x440   :  { %399 = vrot.lane.b32.xlu1 %v397_v47, %s2773_s23  ;;  %v169_v47 = vadd.f32 %v2875_v12, %v2931_v63 }
 0x4b2   :  { %v400_v49 = vpop.permute.xlu1 %399 }
 0x4b3   :  { %v402_v50 = vadd.f32 %v400_v49, %v392_v48 }
 0x4b5   :  { %2651 = vtanh.f32 %v402_v50 }
 0x4bf   :  { %v2652_v57 = vpop.eup %2651 }
 0x4c0   :  { %405 = vrot.lane.b32.xlu0 %v2652_v57, %s2772_s3 }
 0x532   :  { %v406_v58 = vpop.permute.xlu0 %405 }
 0x533   :  { %v408_v59 = vmul.f32 %v406_v58, %v391_v45 }
 0x535   :  { %410 = vrot.lane.b32.xlu1 %v408_v59, %s2773_s23 }
 0x5a7   :  { %v411_v3 = vpop.permute.xlu1 %410 }
 0x5a8   :  { %414 = vst.msk [vmem:[#allocation3 + $0x8] sm:$0xff] %vm200_vm6, %v411_v3  ;;  %2346 = vmatmul.mubr.msk.f32.vlgmr.msra.gmra.mrb[8].mxu0 %vm200_vm6, %v411_v3 }
 0x5a9   :  { %2548 = vmatpush3.bf16.msra.mxu0 %v2834_v4  ;;  %2367 = vmatprep.mubr.msk.f32.mxu0 %vm2770_vm2, %v2771_v8 }
 0x5aa   :  { %2549 = vmatprep.subr.bf16.mxu0 %v2769_v0 }
 0x5ad   :  { %2551 = vmatpush3.bf16.msra.mxu0 %v2855_v10 }
 0x5ae   :  { %2558 = vmatprep.subr.bf16.mxu0 %v2769_v0 }
 0x67b   :  { %v489_v6 = vpop.f32.mrb[8].mxu0 }
 0x67c   :  { %v493_v7 = vadd.f32 %v489_v6, %v159_v5  ;;  %v2347_v9 = vpop.f32.mrb[9].mxu0 }
 0x67e   :  { %v2157_v11 = vmul.f32 -1.442695, %v493_v7 }
 0x680   :  { %2653 = vpow2.f32 %v2157_v11 }
 0x681   :  { %2655 = vtanh.f32 %v493_v7  ;;  %v174_v7 = vadd.f32 %v2929_v62, %v2875_v12 }
 0x68a   :  { %v2654_v13 = vpop.eup %2653 }
 0x68b   :  { %v498_v14 = vadd.f32 1.0, %v2654_v13  ;;  %v2656_v15 = vpop.eup %2655 }
 0x68d   :  { %2657 = vrcp.f32 %v498_v14 }
 0x697   :  { %v2658_v16 = vpop.eup %2657 }
 0x698   :  { %v501_v17 = vsel %vm2878_vm5, %v2656_v15, %v2658_v16 }
 0x699   :  { %504 = vrot.lane.b32.xlu0 %v501_v17, %s2772_s3  ;;  %v502_v20 = vmul.f32 %v501_v17, %v402_v50 }
 0x70b   :  { %v505_v18 = vpop.permute.xlu0 %504 }
 0x70c   :  { %v507_v19 = vmul.f32 %v505_v18, %v501_v17 }
 0x70e   :  { %509 = vrot.lane.b32.xlu1 %v507_v19, %s2773_s23 }
 0x780   :  { %v510_v21 = vpop.permute.xlu1 %509 }
 0x781   :  { %v512_v22 = vadd.f32 %v510_v21, %v502_v20 }
 0x783   :  { %2659 = vtanh.f32 %v512_v22 }
 0x78d   :  { %v2660_v24 = vpop.eup %2659 }
 0x78e   :  { %515 = vrot.lane.b32.xlu0 %v2660_v24, %s2772_s3  ;;  %v1084_v24 = vld [vmem:[%s3223_s4 + $0x8] sm:$0xff] }
 0x800   :  { %v516_v25 = vpop.permute.xlu0 %515 }
 0x801   :  { %v518_v26 = vmul.f32 %v516_v25, %v501_v17 }
 0x803   :  { %520 = vrot.lane.b32.xlu1 %v518_v26, %s2773_s23 }
 0x875   :  { %v521_v27 = vpop.permute.xlu1 %520 }
 0x876   :  { %524 = vst.msk [vmem:[#allocation3 + $0x10] sm:$0xff] %vm200_vm6, %v521_v27  ;;  %2357 = vmatmul.mubr.msk.f32.vlgmr.msra.gmra.mrb[4].mxu1 %vm200_vm6, %v521_v27 }
 0x877   :  { %2554 = vmatpush3.bf16.msra.mxu1 %v2834_v4  ;;  %2378 = vmatprep.mubr.msk.f32.mxu1 %vm2770_vm2, %v2771_v8 }
 0x878   :  { %2555 = vmatprep.subr.bf16.mxu1 %v2769_v0 }
 0x87b   :  { %2557 = vmatpush3.bf16.msra.mxu1 %v2855_v10 }
 0x87c   :  { %2564 = vmatprep.subr.bf16.mxu1 %v2769_v0 }
 0x949   :  { %v599_v29 = vpop.f32.mrb[4].mxu1 }
 0x94a   :  { %v603_v30 = vadd.f32 %v599_v29, %v164_v28  ;;  %v2358_v31 = vpop.f32.mrb[5].mxu1  ;;  %v1085_v29 = vld [vmem:[%s3223_s4 + $0x10] sm:$0xff] }
 0x94c   :  { %v2159_v32 = vmul.f32 -1.442695, %v603_v30 }
 0x94e   :  { %2661 = vpow2.f32 %v2159_v32 }
 0x94f   :  { %2663 = vtanh.f32 %v603_v30  ;;  %v1086_v30 = vld [vmem:[%s3223_s4 + $0x18] sm:$0xff] }
 0x950   :  { %v2574_v31 = vpack.c.bf16 %v1086_v30, %v1085_v29 }
 0x958   :  { %v2662_v33 = vpop.eup %2661 }
 0x959   :  { %v608_v34 = vadd.f32 1.0, %v2662_v33  ;;  %v2664_v35 = vpop.eup %2663  ;;  %v1075_v33 = vld [vmem:[#allocation3] sm:$0xff] }
 0x95b   :  { %2665 = vrcp.f32 %v608_v34  ;;  %v1076_v34 = vld [vmem:[#allocation3 + $0x8] sm:$0xff] }
 0x965   :  { %v2666_v36 = vpop.eup %2665 }
 0x966   :  { %v611_v37 = vsel %vm2878_vm5, %v2664_v35, %v2666_v36  ;;  %v1077_v35 = vld [vmem:[#allocation3 + $0x10] sm:$0xff] }
 0x967   :  { %614 = vrot.lane.b32.xlu0 %v611_v37, %s2772_s3  ;;  %v612_v40 = vmul.f32 %v611_v37, %v512_v22  ;;  %v1083_v22 = vld [vmem:[%s3223_s4] sm:$0xff] }
 0x968   :  { %v2570_v25 = vpack.c.bf16 %v1084_v24, %v1083_v22 }
 0x9d9   :  { %v615_v38 = vpop.permute.xlu0 %614 }
 0x9da   :  { %v617_v39 = vmul.f32 %v615_v38, %v611_v37 }
 0x9dc   :  { %619 = vrot.lane.b32.xlu1 %v617_v39, %s2773_s23  ;;  %v179_v39 = vadd.f32 %v2875_v12, %v2935_v2 }
 0xa4e   :  { %v620_v41 = vpop.permute.xlu1 %619 }
 0xa4f   :  { %v622_v42 = vadd.f32 %v620_v41, %v612_v40 }
 0xa51   :  { %2667 = vtanh.f32 %v622_v42 }
 0xa5b   :  { %v2668_v43 = vpop.eup %2667 }
 0xa5c   :  { %625 = vrot.lane.b32.xlu0 %v2668_v43, %s2772_s3 }
 0xace   :  { %v626_v44 = vpop.permute.xlu0 %625 }
 0xacf   :  { %v628_v45 = vmul.f32 %v626_v44, %v611_v37 }
 0xad1   :  { %630 = vrot.lane.b32.xlu1 %v628_v45, %s2773_s23 }
 0xb43   :  { %v631_v46 = vpop.permute.xlu1 %630 }
 0xb44   :  { %634 = vst.msk [vmem:[#allocation3 + $0x18] sm:$0xff] %vm200_vm6, %v631_v46  ;;  %2368 = vmatmul.mubr.msk.f32.vlgmr.msra.gmra.mrb[10].mxu0 %vm200_vm6, %v631_v46 }
 0xb45   :  { %2560 = vmatpush3.bf16.msra.mxu0 %v2834_v4  ;;  %2389 = vmatprep.mubr.msk.f32.mxu0 %vm2770_vm2, %v2771_v8 }
 0xb46   :  { %2561 = vmatprep.subr.bf16.mxu0 %v2769_v0 }
 0xb49   :  { %2563 = vmatpush3.bf16.msra.mxu0 %v2855_v10 }
 0xb4a   :  { %2571 = vmatprep.subr.bf16.mxu0 %v2570_v25 }
 0xb4b   :  { %v1078_v36 = vld [vmem:[#allocation3 + $0x18] sm:$0xff] }
 0xc17   :  { %v709_v48 = vpop.f32.mrb[10].mxu0 }
 0xc18   :  { %v713_v49 = vadd.f32 %v709_v48, %v169_v47  ;;  %v2369_v50 = vpop.f32.mrb[11].mxu0 }
 0xc1a   :  { %v2161_v51 = vmul.f32 -1.442695, %v713_v49 }
 0xc1c   :  { %2669 = vpow2.f32 %v2161_v51 }
 0xc1d   :  { %2671 = vtanh.f32 %v713_v49 }
 0xc26   :  { %v2670_v52 = vpop.eup %2669 }
 0xc27   :  { %v718_v53 = vadd.f32 1.0, %v2670_v52  ;;  %v2672_v54 = vpop.eup %2671 }
 0xc29   :  { %2673 = vrcp.f32 %v718_v53 }
 0xc33   :  { %v2674_v55 = vpop.eup %2673 }
 0xc34   :  { %v721_v56 = vsel %vm2878_vm5, %v2672_v54, %v2674_v55 }
 0xc35   :  { %724 = vrot.lane.b32.xlu0 %v721_v56, %s2772_s3  ;;  %v722_v59 = vmul.f32 %v721_v56, %v622_v42 }
 0xca7   :  { %v725_v57 = vpop.permute.xlu0 %724 }
 0xca8   :  { %v727_v58 = vmul.f32 %v725_v57, %v721_v56 }
 0xcaa   :  { %729 = vrot.lane.b32.xlu1 %v727_v58, %s2773_s23 }
 0xd1c   :  { %v730_v60 = vpop.permute.xlu1 %729 }
 0xd1d   :  { %v732_v61 = vadd.f32 %v730_v60, %v722_v59  ;;  %v1232_v60 = vld [vmem:[%s3224_s5] sm:$0xff] }
 0xd1f   :  { %2675 = vtanh.f32 %v732_v61 }
 0xd29   :  { %v2676_v63 = vpop.eup %2675 }
 0xd2a   :  { %735 = vrot.lane.b32.xlu0 %v2676_v63, %s2772_s3 }
 0xd9c   :  { %v736_v3 = vpop.permute.xlu0 %735 }
 0xd9d   :  { %v738_v5 = vmul.f32 %v736_v3, %v721_v56  ;;  %v1234_v3 = vld [vmem:[%s3224_s5 + $0x10] sm:$0xff] }
 0xd9f   :  { %740 = vrot.lane.b32.xlu1 %v738_v5, %s2773_s23  ;;  %v1235_v5 = vld [vmem:[%s3224_s5 + $0x18] sm:$0xff] }
 0xe11   :  { %v741_v6 = vpop.permute.xlu1 %740 }
 0xe12   :  { %744 = vst.msk [vmem:[#allocation3 + $0x20] sm:$0xff] %vm200_vm6, %v741_v6  ;;  %2379 = vmatmul.mubr.msk.f32.vlgmr.msra.gmra.mrb[6].mxu1 %vm200_vm6, %v741_v6  ;;  %v3055_v6 = vpack.c.bf16 %v1235_v5, %v1234_v3 }
 0xe13   :  { %2566 = vmatpush3.bf16.msra.mxu1 %v2834_v4  ;;  %2400 = vmatprep.mubr.msk.f32.mxu1 %vm2770_vm2, %v2771_v8 }
 0xe14   :  { %2567 = vmatprep.subr.bf16.mxu1 %v2769_v0 }
 0xe17   :  { %2569 = vmatpush3.bf16.msra.mxu1 %v2855_v10 }
 0xe18   :  { %2578 = vmatprep.subr.bf16.mxu1 %v2769_v0 }
 0xe19   :  { %v1079_v37 = vld [vmem:[#allocation3 + $0x20] sm:$0xff] }
 0xee5   :  { %v819_v9 = vpop.f32.mrb[6].mxu1 }
 0xee6   :  { %v823_v11 = vadd.f32 %v819_v9, %v174_v7  ;;  %v2380_v13 = vpop.f32.mrb[7].mxu1 }
 0xee8   :  { %v2163_v14 = vmul.f32 -1.442695, %v823_v11 }
 0xeea   :  { %2677 = vpow2.f32 %v2163_v14  ;;  %v184_v14 = vadd.f32 %v2933_v1, %v2875_v12 }
 0xeeb   :  { %2679 = vtanh.f32 %v823_v11 }
 0xef4   :  { %v2678_v15 = vpop.eup %2677 }
 0xef5   :  { %v828_v16 = vadd.f32 1.0, %v2678_v15  ;;  %v2680_v4 = vpop.eup %2679 }
 0xef7   :  { %2681 = vrcp.f32 %v828_v16 }
 0xf01   :  { %v2682_v17 = vpop.eup %2681 }
 0xf02   :  { %v831_v18 = vsel %vm2878_vm5, %v2680_v4, %v2682_v17  ;;  %v3081_v17 = vld [vmem:[%s3225_s6] ss:$0 sm:$0xff] }
 0xf03   :  { %834 = vrot.lane.b32.xlu0 %v831_v18, %s2772_s3  ;;  %v832_v62 = vmul.f32 %v831_v18, %v732_v61  ;;  %v1233_v61 = vld [vmem:[%s3224_s5 + $0x8] sm:$0xff] }
 0xf04   :  { %v3045_v63 = vpack.c.bf16 %v1233_v61, %v1232_v60 }
 0xf75   :  { %v835_v10 = vpop.permute.xlu0 %834 }
 0xf76   :  { %v837_v19 = vmul.f32 %v835_v10, %v831_v18 }
 0xf78   :  { %839 = vrot.lane.b32.xlu1 %v837_v19, %s2773_s23 }
 0xfea   :  { %v840_v20 = vpop.permute.xlu1 %839 }
 0xfeb   :  { %v842_v21 = vadd.f32 %v840_v20, %v832_v62 }
 0xfed   :  { %2683 = vtanh.f32 %v842_v21 }
 0xff7   :  { %v2684_v26 = vpop.eup %2683 }
 0xff8   :  { %845 = vrot.lane.b32.xlu0 %v2684_v26, %s2772_s3 }
0x106a   :  { %v846_v27 = vpop.permute.xlu0 %845 }
0x106b   :  { %v848_v28 = vmul.f32 %v846_v27, %v831_v18 }
0x106d   :  { %850 = vrot.lane.b32.xlu1 %v848_v28, %s2773_s23 }
0x10df   :  { %v851_v32 = vpop.permute.xlu1 %850 }
0x10e0   :  { %854 = vst.msk [vmem:[#allocation3 + $0x28] sm:$0xff] %vm200_vm6, %v851_v32  ;;  %2390 = vmatmul.mubr.msk.f32.vlgmr.msra.gmra.mrb[12].mxu0 %vm200_vm6, %v851_v32 }
0x10e1   :  { %2573 = vmatpush3.bf16.msra.mxu0 %v2570_v25  ;;  %2411 = vmatprep.mubr.msk.f32.mxu0 %vm200_vm6, %v1075_v33 }
0x10e2   :  { %2575 = vmatprep.subr.bf16.mxu0 %v2574_v31 }
0x10e5   :  { %2577 = vmatpush3.bf16.msra.mxu0 %v2574_v31 }
0x10e6   :  { %2590 = vmatprep.subr.bf16.mxu0 %v2769_v0 }
0x10e7   :  { %v1080_v38 = vld [vmem:[#allocation3 + $0x28] sm:$0xff] }
0x10e8   :  { %2412 = vmatmul.mubr.msk.f32.vlgmr.msra.gmra.mrb[14].mxu0 %vm200_vm6, %v1076_v34 }
0x10e9   :  { %2414 = vmatprep.mubr.msk.f32.mxu0 %vm200_vm6, %v1077_v35  ;;  %2592 = vmatpush3.bf16.msra.mxu0 %v3045_v63 }
0x10ea   :  { %2593 = vmatprep.subr.bf16.mxu0 %v2769_v0 }
0x10ec   :  { %2415 = vmatmul.mubr.msk.f32.gmra.mrb[16].mxu0 %vm200_vm6, %v1078_v36 }
0x10ed   :  { %2417 = vmatprep.mubr.msk.f32.mxu0 %vm200_vm6, %v1079_v37  ;;  %2595 = vmatpush3.bf16.msra.mxu0 %v3055_v6 }
0x10ee   :  { %2602 = vmatprep.subr.bf16.mxu0 %v2769_v0 }
0x10f0   :  { %2418 = vmatmul.mubr.msk.f32.gmra.mrb[18].mxu0 %vm200_vm6, %v1080_v38 }
0x11b3   :  { %v929_v40 = vpop.f32.mrb[12].mxu0 }
0x11b4   :  { %v933_v41 = vadd.f32 %v929_v40, %v179_v39  ;;  %v2391_v42 = vpop.f32.mrb[13].mxu0 }
0x11b6   :  { %v2165_v43 = vmul.f32 -1.442695, %v933_v41 }
0x11b8   :  { %2685 = vpow2.f32 %v2165_v43 }
0x11b9   :  { %2687 = vtanh.f32 %v933_v41 }
0x11bb   :  { %v3021_v44 = vpop.f32.mrb[14].mxu0 }
0x11bc   :  { %v1184_v45 = vpop.f32.mrb[15].mxu0 }
0x11bd   :  { %v1185_v18 = vadd.f32 %v3081_v17, %v1184_v45 }
0x11bf   :  { %v3023_v46 = vpop.f32.mrb[16].mxu0 }
0x11c0   :  { %v3025_v47 = vpop.f32.mrb[17].mxu0 }
0x11c2   :  { %v2686_v48 = vpop.eup %2685 }
0x11c3   :  { %v938_v49 = vadd.f32 1.0, %v2686_v48  ;;  %v3027_v50 = vpop.f32.mrb[18].mxu0  ;;  %v2688_v2 = vpop.eup %2687 }
0x11c4   :  { %v3029_v51 = vpop.f32.mrb[19].mxu0 }
0x11c5   :  { %2689 = vrcp.f32 %v938_v49 }
0x11cf   :  { %v2690_v52 = vpop.eup %2689 }
0x11d0   :  { %v941_v53 = vsel %vm2878_vm5, %v2688_v2, %v2690_v52  ;;  %v1190_v52 = vadd.f32 %v3021_v44, %v3081_v17 }
0x11d1   :  { %944 = vrot.lane.b32.xlu0 %v941_v53, %s2772_s3  ;;  %v942_v56 = vmul.f32 %v941_v53, %v842_v21 }
0x1243   :  { %v945_v54 = vpop.permute.xlu0 %944 }
0x1244   :  { %v947_v55 = vmul.f32 %v945_v54, %v941_v53 }
0x1246   :  { %949 = vrot.lane.b32.xlu1 %v947_v55, %s2773_s23 }
0x12b8   :  { %v950_v57 = vpop.permute.xlu1 %949 }
0x12b9   :  { %v3035_v58 = vadd.f32 %v950_v57, %v942_v56 }
0x12bb   :  { %2691 = vtanh.f32 %v3035_v58 }
0x12c5   :  { %v2692_v59 = vpop.eup %2691 }
0x12c6   :  { %955 = vrot.lane.b32.xlu0 %v2692_v59, %s2772_s3 }
0x1338   :  { %v956_v7 = vpop.permute.xlu0 %955 }
0x1339   :  { %v958_v9 = vmul.f32 %v956_v7, %v941_v53 }
0x133b   :  { %960 = vrot.lane.b32.xlu1 %v958_v9, %s2773_s23 }
0x13ad   :  { %v961_v11 = vpop.permute.xlu1 %960 }
0x13ae   :  { %964 = vst.msk [vmem:[#allocation3 + $0x30] sm:$0xff] %vm200_vm6, %v961_v11  ;;  %2401 = vmatmul.mubr.msk.f32.vlgmr.msra.gmra.mrb[8].mxu1 %vm200_vm6, %v961_v11 }
0x13af   :  { %2580 = vmatpush3.bf16.msra.mxu1 %v3045_v63  ;;  %2431 = vmatprep.mubr.msk.f32.mxu1 %vm2770_vm2, %v2771_v8 }
0x13b0   :  { %2581 = vmatprep.subr.bf16.mxu1 %v2769_v0 }
0x13b3   :  { %2583 = vmatpush3.bf16.msra.mxu1 %v3055_v6 }
0x13b4   :  { %2584 = vmatprep.subr.bf16.mxu1 %v2769_v0 }
0x13b5   :  { %v1081_v13 = vld [vmem:[#allocation3 + $0x30] sm:$0xff] }
0x13b6   :  { %2432 = vmatmul.mubr.f32.vlgmr.msra.gmra.mrb[10].mxu1 %v2771_v8  ;;  %2420 = vmatprep.mubr.msk.f32.mxu0 %vm200_vm6, %v1081_v13 }
0x13b7   :  { %2586 = vmatpush3.bf16.msra.mxu1 %v3045_v63  ;;  %2442 = vmatprep.mubr.msk.f32.mxu1 %vm2770_vm2, %v2771_v8 }
0x13b8   :  { %2587 = vmatprep.subr.bf16.mxu1 %v2769_v0 }
0x13bb   :  { %2589 = vmatpush3.bf16.msra.mxu1 %v3055_v6 }
0x13bc   :  { %2596 = vmatprep.subr.bf16.mxu1 %v2769_v0 }
0x1481   :  { %v1039_v15 = vpop.f32.mrb[8].mxu1 }
0x1482   :  { %v1043_v16 = vadd.f32 %v1039_v15, %v184_v14  ;;  %v2402_v4 = vpop.f32.mrb[9].mxu1 }
0x1484   :  { %v2167_v27 = vmul.f32 -1.442695, %v1043_v16 }
0x1489   :  { %v1302_v10 = vpop.f32.mrb[10].mxu1 }
0x148a   :  { %v1306_v19 = vadd.f32 %v1302_v10, %v1185_v18  ;;  %v2433_v62 = vpop.f32.mrb[11].mxu1 }
0x148c   :  { %v2177_v20 = vmul.f32 -1.442695, %v1306_v19 }
0x148e   :  { %2693 = vpow2.f32 %v2177_v20 }
0x148f   :  { %2695 = vtanh.f32 %v1306_v19  ;;  %v1195_v19 = vadd.f32 %v3081_v17, %v3025_v47 }
0x1498   :  { %v2694_v21 = vpop.eup %2693 }
0x1499   :  { %v1311_v22 = vadd.f32 1.0, %v2694_v21  ;;  %v2696_v12 = vpop.eup %2695 }
0x149b   :  { %2697 = vrcp.f32 %v1311_v22 }
0x149c   :  { %2699 = vpow2.f32 %v2167_v27 }
0x14a5   :  { %v2698_v1 = vpop.eup %2697 }
0x14a6   :  { %v1314_v24 = vsel %vm2878_vm5, %v2696_v12, %v2698_v1  ;;  %v2700_v28 = vpop.eup %2699 }
0x14a7   :  { %1317 = vrot.lane.b32.xlu0 %v1314_v24, %s2772_s3  ;;  %v1315_v29 = vmul.f32 0.0, %v1314_v24  ;;  %v1048_v30 = vadd.f32 1.0, %v2700_v28 }
0x1519   :  { %v1318_v25 = vpop.permute.xlu0 %1317 }
0x151a   :  { %v1320_v26 = vmul.f32 %v1318_v25, %v1314_v24 }
0x151c   :  { %1322 = vrot.lane.b32.xlu1 %v1320_v26, %s2773_s23 }
0x158e   :  { %v1323_v31 = vpop.permute.xlu1 %1322 }
0x158f   :  { %v1325_v32 = vadd.f32 %v1323_v31, %v1315_v29 }
0x1591   :  { %2701 = vtanh.f32 %v1325_v32 }
0x1592   :  { %2703 = vrcp.f32 %v1048_v30 }
0x1593   :  { %2705 = vtanh.f32 %v1043_v16 }
0x159b   :  { %v2702_v33 = vpop.eup %2701 }
0x159c   :  { %v2704_v34 = vpop.eup %2703  ;;  %1328 = vrot.lane.b32.xlu0 %v2702_v33, %s2772_s3 }
0x159d   :  { %v2706_v35 = vpop.eup %2705 }
0x159e   :  { %v1051_v36 = vsel %vm2878_vm5, %v2706_v35, %v2704_v34  ;;  %v1200_v35 = vadd.f32 %v3023_v46, %v3081_v17 }
0x159f   :  { %v1052_v42 = vmul.f32 %v1051_v36, %v3035_v58 }
0x15a0   :  { %1054 = vrot.lane.b32.xlu0 %v1051_v36, %s2772_s3 }
0x160e   :  { %v1329_v37 = vpop.permute.xlu0 %1328 }
0x160f   :  { %v1331_v38 = vmul.f32 %v1329_v37, %v1314_v24 }
0x1611   :  { %1334 = vrot.lane.b32.xlu1 %v1331_v38, %s2773_s23 }
0x1612   :  { %v1055_v39 = vpop.permute.xlu0 %1054 }
0x1613   :  { %v1057_v40 = vmul.f32 %v1055_v39, %v1051_v36 }
0x1615   :  { %1059 = vrot.lane.b32.xlu0 %v1057_v40, %s2773_s23 }
0x1683   :  { %v1335_v41 = vpop.permute.xlu1 %1334 }
0x1684   :  { %2443 = vmatmul.mubr.msk.f32.vlgmr.msra.gmra.mrb[12].mxu1 %vm200_vm6, %v1335_v41 }
0x1685   :  { %2598 = vmatpush3.bf16.msra.mxu1 %v3045_v63  ;;  %2464 = vmatprep.mubr.msk.f32.mxu1 %vm2770_vm2, %v2771_v8 }
0x1686   :  { %2599 = vmatprep.subr.bf16.mxu1 %v2769_v0 }
0x1687   :  { %v1060_v43 = vpop.permute.xlu0 %1059 }
0x1688   :  { %v1062_v45 = vadd.f32 %v1060_v43, %v1052_v42 }
0x1689   :  { %2601 = vmatpush3.bf16.msra.mxu1 %v3055_v6 }
0x168a   :  { %2707 = vtanh.f32 %v1062_v45  ;;  %2608 = vmatprep.subr.bf16.mxu1 %v2769_v0 }
0x1694   :  { %v2708_v48 = vpop.eup %2707 }
0x1695   :  { %1065 = vrot.lane.b32.xlu0 %v2708_v48, %s2772_s3 }
0x1707   :  { %v1066_v49 = vpop.permute.xlu0 %1065 }
0x1708   :  { %v1068_v2 = vmul.f32 %v1066_v49, %v1051_v36 }
0x170a   :  { %1070 = vrot.lane.b32.xlu0 %v1068_v2, %s2773_s23 }
0x1757   :  { %v1404_v53 = vpop.f32.mrb[12].mxu1 }
0x1758   :  { %v1408_v54 = vadd.f32 %v1404_v53, %v1190_v52  ;;  %v2444_v55 = vpop.f32.mrb[13].mxu1 }
0x175a   :  { %v2179_v56 = vmul.f32 -1.442695, %v1408_v54 }
0x175c   :  { %2709 = vpow2.f32 %v2179_v56 }
0x175d   :  { %2711 = vtanh.f32 %v1408_v54 }
0x1766   :  { %v2710_v57 = vpop.eup %2709 }
0x1767   :  { %v1413_v58 = vadd.f32 1.0, %v2710_v57  ;;  %v2712_v59 = vpop.eup %2711  ;;  %v1205_v57 = vadd.f32 %v3081_v17, %v3029_v51 }
0x1769   :  { %2713 = vrcp.f32 %v1413_v58 }
0x1773   :  { %v2714_v60 = vpop.eup %2713 }
0x1774   :  { %v1416_v61 = vsel %vm2878_vm5, %v2712_v59, %v2714_v60 }
0x1775   :  { %1419 = vrot.lane.b32.xlu1 %v1416_v61, %s2772_s3  ;;  %v1417_v13 = vmul.f32 %v1416_v61, %v1325_v32 }
0x177c   :  { %v1071_v3 = vpop.permute.xlu0 %1070 }
0x177d   :  { %1074 = vst.msk [vmem:[#allocation3 + $0x38] sm:$0xff] %vm200_vm6, %v1071_v3 }
0x1784   :  { %v1082_v44 = vld [vmem:[#allocation3 + $0x38] sm:$0xff] }
0x1785   :  { %2421 = vmatmul.mubr.msk.f32.gmra.mrb[20].mxu0 %vm200_vm6, %v1082_v44 }
0x1786   :  { %2453 = vmatprep.mubr.msk.f32.mxu0 %vm2770_vm2, %v2771_v8 }
0x17e7   :  { %v1420_v5 = vpop.permute.xlu1 %1419 }
0x17e8   :  { %v1422_v7 = vmul.f32 %v1420_v5, %v1416_v61 }
0x17ea   :  { %1424 = vrot.lane.b32.xlu1 %v1422_v7, %s2773_s23 }
0x1858   :  { %v3114_v9 = vpop.f32.mrb[20].mxu0 }
0x1859   :  { %v3116_v11 = vpop.f32.mrb[21].mxu0 }
0x185c   :  { %v1425_v14 = vpop.permute.xlu1 %1424 }
0x185d   :  { %v1427_v15 = vadd.f32 %v1425_v14, %v1417_v13 }
0x185f   :  { %2715 = vtanh.f32 %v1427_v15 }
0x1869   :  { %v2716_v16 = vpop.eup %2715 }
0x186a   :  { %1430 = vrot.lane.b32.xlu1 %v2716_v16, %s2772_s3 }
0x18dc   :  { %v1431_v4 = vpop.permute.xlu1 %1430 }
0x18dd   :  { %v1433_v18 = vmul.f32 %v1431_v4, %v1416_v61 }
0x18df   :  { %1436 = vrot.lane.b32.xlu1 %v1433_v18, %s2773_s23 }
0x1951   :  { %v1437_v10 = vpop.permute.xlu1 %1436 }
0x1952   :  { %2454 = vmatmul.mubr.msk.f32.vlgmr.msra.gmra.mrb[22].mxu0 %vm200_vm6, %v1437_v10 }
0x1953   :  { %2604 = vmatpush3.bf16.msra.mxu0 %v3045_v63  ;;  %2475 = vmatprep.mubr.msk.f32.mxu0 %vm2770_vm2, %v2771_v8 }
0x1954   :  { %2605 = vmatprep.subr.bf16.mxu0 %v2769_v0 }
0x1957   :  { %2607 = vmatpush3.bf16.msra.mxu0 %v3055_v6 }
0x1958   :  { %2614 = vmatprep.subr.bf16.mxu0 %v2769_v0 }
0x1a25   :  { %v1506_v62 = vpop.f32.mrb[22].mxu0 }
0x1a26   :  { %v1510_v20 = vadd.f32 %v1506_v62, %v1195_v19  ;;  %v2455_v21 = vpop.f32.mrb[23].mxu0 }
0x1a28   :  { %v2181_v22 = vmul.f32 -1.442695, %v1510_v20 }
0x1a2a   :  { %2717 = vpow2.f32 %v2181_v22 }
0x1a2b   :  { %2719 = vtanh.f32 %v1510_v20  ;;  %v1210_v20 = vadd.f32 %v3027_v50, %v3081_v17 }
0x1a34   :  { %v2718_v12 = vpop.eup %2717 }
0x1a35   :  { %v1515_v1 = vadd.f32 1.0, %v2718_v12  ;;  %v2720_v24 = vpop.eup %2719 }
0x1a37   :  { %2721 = vrcp.f32 %v1515_v1 }
0x1a41   :  { %v2722_v25 = vpop.eup %2721 }
0x1a42   :  { %v1518_v26 = vsel %vm2878_vm5, %v2720_v24, %v2722_v25 }
0x1a43   :  { %1521 = vrot.lane.b32.xlu0 %v1518_v26, %s2772_s3  ;;  %v1519_v47 = vmul.f32 %v1518_v26, %v1427_v15 }
0x1ab5   :  { %v1522_v27 = vpop.permute.xlu0 %1521 }
0x1ab6   :  { %v1524_v28 = vmul.f32 %v1522_v27, %v1518_v26 }
0x1ab8   :  { %1526 = vrot.lane.b32.xlu1 %v1524_v28, %s2773_s23 }
0x1b2a   :  { %v1527_v29 = vpop.permute.xlu1 %1526 }
0x1b2b   :  { %v1529_v30 = vadd.f32 %v1527_v29, %v1519_v47 }
0x1b2d   :  { %2723 = vtanh.f32 %v1529_v30 }
0x1b37   :  { %v2724_v31 = vpop.eup %2723 }
0x1b38   :  { %1532 = vrot.lane.b32.xlu0 %v2724_v31, %s2772_s3 }
0x1baa   :  { %v1533_v32 = vpop.permute.xlu0 %1532 }
0x1bab   :  { %v1535_v33 = vmul.f32 %v1533_v32, %v1518_v26 }
0x1bad   :  { %1538 = vrot.lane.b32.xlu1 %v1535_v33, %s2773_s23 }
0x1c1f   :  { %v1539_v34 = vpop.permute.xlu1 %1538 }
0x1c20   :  { %2465 = vmatmul.mubr.msk.f32.vlgmr.msra.gmra.mrb[14].mxu1 %vm200_vm6, %v1539_v34  ;;  %v1215_v34 = vadd.f32 %v3081_v17, %v3116_v11 }
0x1c21   :  { %2610 = vmatpush3.bf16.msra.mxu1 %v3045_v63  ;;  %2486 = vmatprep.mubr.msk.f32.mxu1 %vm2770_vm2, %v2771_v8 }
0x1c22   :  { %2611 = vmatprep.subr.bf16.mxu1 %v2769_v0 }
0x1c25   :  { %2613 = vmatpush3.bf16.msra.mxu1 %v3055_v6 }
0x1c26   :  { %2620 = vmatprep.subr.bf16.mxu1 %v2769_v0 }
0x1cf3   :  { %v1608_v36 = vpop.f32.mrb[14].mxu1 }
0x1cf4   :  { %v1612_v37 = vadd.f32 %v1608_v36, %v1200_v35  ;;  %v2466_v38 = vpop.f32.mrb[15].mxu1 }
0x1cf6   :  { %v2183_v39 = vmul.f32 -1.442695, %v1612_v37 }
0x1cf8   :  { %2725 = vpow2.f32 %v2183_v39 }
0x1cf9   :  { %2727 = vtanh.f32 %v1612_v37 }
0x1d02   :  { %v2726_v40 = vpop.eup %2725 }
0x1d03   :  { %v1617_v41 = vadd.f32 1.0, %v2726_v40  ;;  %v2728_v42 = vpop.eup %2727 }
0x1d05   :  { %2729 = vrcp.f32 %v1617_v41 }
0x1d0f   :  { %v2730_v43 = vpop.eup %2729 }
0x1d10   :  { %v1620_v45 = vsel %vm2878_vm5, %v2728_v42, %v2730_v43 }
0x1d11   :  { %1623 = vrot.lane.b32.xlu0 %v1620_v45, %s2772_s3  ;;  %v1621_v46 = vmul.f32 %v1620_v45, %v1529_v30 }
0x1d83   :  { %v1624_v48 = vpop.permute.xlu0 %1623 }
0x1d84   :  { %v1626_v49 = vmul.f32 %v1624_v48, %v1620_v45 }
0x1d86   :  { %1628 = vrot.lane.b32.xlu1 %v1626_v49, %s2773_s23 }
0x1df8   :  { %v1629_v2 = vpop.permute.xlu1 %1628 }
0x1df9   :  { %v1631_v52 = vadd.f32 %v1629_v2, %v1621_v46 }
0x1dfb   :  { %2731 = vtanh.f32 %v1631_v52 }
0x1e05   :  { %v2732_v53 = vpop.eup %2731 }
0x1e06   :  { %1634 = vrot.lane.b32.xlu0 %v2732_v53, %s2772_s3 }
0x1e78   :  { %v1635_v54 = vpop.permute.xlu0 %1634 }
0x1e79   :  { %v1637_v55 = vmul.f32 %v1635_v54, %v1620_v45  ;;  %v1220_v54 = vadd.f32 %v3114_v9, %v3081_v17 }
0x1e7b   :  { %1640 = vrot.lane.b32.xlu1 %v1637_v55, %s2773_s23 }
0x1eed   :  { %v1641_v56 = vpop.permute.xlu1 %1640 }
0x1eee   :  { %2476 = vmatmul.mubr.msk.f32.vlgmr.msra.gmra.mrb[24].mxu0 %vm200_vm6, %v1641_v56 }
0x1eef   :  { %2616 = vmatpush3.bf16.msra.mxu0 %v3045_v63  ;;  %2497 = vmatprep.mubr.msk.f32.mxu0 %vm2770_vm2, %v2771_v8 }
0x1ef0   :  { %2617 = vmatprep.subr.bf16.mxu0 %v2769_v0 }
0x1ef3   :  { %2619 = vmatpush3.bf16.msra.mxu0 %v3055_v6 }
0x1ef4   :  { %2626 = vmatprep.subr.bf16.mxu0 %v2769_v0 }
0x1fc1   :  { %v1710_v58 = vpop.f32.mrb[24].mxu0 }
0x1fc2   :  { %v1714_v59 = vadd.f32 %v1710_v58, %v1205_v57  ;;  %v2477_v60 = vpop.f32.mrb[25].mxu0 }
0x1fc4   :  { %v2185_v61 = vmul.f32 -1.442695, %v1714_v59 }
0x1fc6   :  { %2733 = vpow2.f32 %v2185_v61 }
0x1fc7   :  { %2735 = vtanh.f32 %v1714_v59 }
0x1fd0   :  { %v2734_v3 = vpop.eup %2733 }
0x1fd1   :  { %v1719_v44 = vadd.f32 1.0, %v2734_v3  ;;  %v2736_v5 = vpop.eup %2735 }
0x1fd3   :  { %2737 = vrcp.f32 %v1719_v44 }
0x1fdd   :  { %v2738_v7 = vpop.eup %2737 }
0x1fde   :  { %v1722_v13 = vsel %vm2878_vm5, %v2736_v5, %v2738_v7 }
0x1fdf   :  { %1725 = vrot.lane.b32.xlu0 %v1722_v13, %s2772_s3  ;;  %v1723_v51 = vmul.f32 %v1722_v13, %v1631_v52 }
0x2051   :  { %v1726_v14 = vpop.permute.xlu0 %1725 }
0x2052   :  { %v1728_v15 = vmul.f32 %v1726_v14, %v1722_v13  ;;  %v2046_v14 = vld [vmem:[%s3226_s7] sm:$0xff] }
0x2054   :  { %1730 = vrot.lane.b32.xlu1 %v1728_v15, %s2773_s23  ;;  %v2047_v15 = vld [vmem:[%s3226_s7 + $0x8] sm:$0xff] }
0x20c6   :  { %v1731_v16 = vpop.permute.xlu1 %1730 }
0x20c7   :  { %v1733_v4 = vadd.f32 %v1731_v16, %v1723_v51  ;;  %v2627_v51 = vpack.c.bf16 %v2047_v15, %v2046_v14  ;;  %v2049_v16 = vld [vmem:[%s3226_s7 + $0x18] sm:$0xff] }
0x20c9   :  { %2739 = vtanh.f32 %v1733_v4 }
0x20d3   :  { %v2740_v18 = vpop.eup %2739 }
0x20d4   :  { %1736 = vrot.lane.b32.xlu0 %v2740_v18, %s2772_s3 }
0x2146   :  { %v1737_v10 = vpop.permute.xlu0 %1736 }
0x2147   :  { %v1739_v19 = vmul.f32 %v1737_v10, %v1722_v13 }
0x2149   :  { %1742 = vrot.lane.b32.xlu1 %v1739_v19, %s2773_s23 }
0x21bb   :  { %v1743_v62 = vpop.permute.xlu1 %1742 }
0x21bc   :  { %2487 = vmatmul.mubr.msk.f32.vlgmr.msra.gmra.mrb[16].mxu1 %vm200_vm6, %v1743_v62 }
0x21bd   :  { %2622 = vmatpush3.bf16.msra.mxu1 %v3045_v63  ;;  %2508 = vmatprep.mubr.msk.f32.mxu1 %vm2770_vm2, %v2771_v8 }
0x21be   :  { %2623 = vmatprep.subr.bf16.mxu1 %v2769_v0 }
0x21c1   :  { %2625 = vmatpush3.bf16.msra.mxu1 %v3055_v6 }
0x228f   :  { %v1812_v21 = vpop.f32.mrb[16].mxu1 }
0x2290   :  { %v1816_v22 = vadd.f32 %v1812_v21, %v1210_v20  ;;  %v2488_v12 = vpop.f32.mrb[17].mxu1  ;;  %v2192_v20 = vld [vmem:[%s3227_s8] ss:$0 sm:$0xff] }
0x2292   :  { %v2187_v1 = vmul.f32 -1.442695, %v1816_v22 }
0x2294   :  { %2741 = vpow2.f32 %v2187_v1 }
0x2295   :  { %2743 = vtanh.f32 %v1816_v22 }
0x229e   :  { %v2742_v24 = vpop.eup %2741 }
0x229f   :  { %v1821_v25 = vadd.f32 1.0, %v2742_v24  ;;  %v2744_v63 = vpop.eup %2743 }
0x22a1   :  { %2745 = vrcp.f32 %v1821_v25 }
0x22ab   :  { %v2746_v26 = vpop.eup %2745 }
0x22ac   :  { %v1824_v27 = vsel %vm2878_vm5, %v2744_v63, %v2746_v26 }
0x22ad   :  { %1827 = vrot.lane.b32.xlu0 %v1824_v27, %s2772_s3  ;;  %v1825_v50 = vmul.f32 %v1824_v27, %v1733_v4  ;;  %v2630_v4 = vpack.c.bf16 %v2049_v16, %v2048_v23 }
0x231f   :  { %v1828_v6 = vpop.permute.xlu0 %1827 }
0x2320   :  { %v1830_v28 = vmul.f32 %v1828_v6, %v1824_v27 }
0x2322   :  { %1832 = vrot.lane.b32.xlu1 %v1830_v28, %s2773_s23 }
0x2394   :  { %v1833_v47 = vpop.permute.xlu1 %1832 }
0x2395   :  { %v1835_v29 = vadd.f32 %v1833_v47, %v1825_v50 }
0x2397   :  { %2747 = vtanh.f32 %v1835_v29 }
0x23a1   :  { %v2748_v30 = vpop.eup %2747 }
0x23a2   :  { %1838 = vrot.lane.b32.xlu0 %v2748_v30, %s2772_s3 }
0x2414   :  { %v1839_v31 = vpop.permute.xlu0 %1838 }
0x2415   :  { %v1841_v32 = vmul.f32 %v1839_v31, %v1824_v27 }
0x2417   :  { %1844 = vrot.lane.b32.xlu1 %v1841_v32, %s2773_s23 }
0x2489   :  { %v1845_v33 = vpop.permute.xlu1 %1844 }
0x248a   :  { %2498 = vmatmul.mubr.msk.f32.vlgmr.msra.gmra.mrb[26].mxu0 %vm200_vm6, %v1845_v33 }
0x248b   :  { %2519 = vmatprep.mubr.msk.f32.mxu0 %vm2770_vm2, %v2771_v8  ;;  %2628 = vmatpush3.bf16.msra.mxu0 %v2627_v51 }
0x248c   :  { %2629 = vmatprep.subr.bf16.mxu0 %v2769_v0 }
0x248f   :  { %2631 = vmatpush3.bf16.msra.mxu0 %v2630_v4 }
0x255d   :  { %v1914_v35 = vpop.f32.mrb[26].mxu0 }
0x255e   :  { %v1918_v36 = vadd.f32 %v1914_v35, %v1215_v34  ;;  %v2499_v37 = vpop.f32.mrb[27].mxu0 }
0x2560   :  { %v2189_v38 = vmul.f32 -1.442695, %v1918_v36 }
0x2562   :  { %2749 = vpow2.f32 %v2189_v38 }
0x2563   :  { %2751 = vtanh.f32 %v1918_v36 }
0x256c   :  { %v2750_v39 = vpop.eup %2749 }
0x256d   :  { %v1923_v40 = vadd.f32 1.0, %v2750_v39  ;;  %v2752_v41 = vpop.eup %2751 }
0x256f   :  { %2753 = vrcp.f32 %v1923_v40 }
0x2579   :  { %v2754_v42 = vpop.eup %2753 }
0x257a   :  { %v1926_v43 = vsel %vm2878_vm5, %v2752_v41, %v2754_v42 }
0x257b   :  { %1929 = vrot.lane.b32.xlu0 %v1926_v43, %s2772_s3  ;;  %v1927_v11 = vmul.f32 %v1926_v43, %v1835_v29 }
0x25ed   :  { %v1930_v8 = vpop.permute.xlu0 %1929 }
0x25ee   :  { %v1932_v45 = vmul.f32 %v1930_v8, %v1926_v43 }
0x25f0   :  { %1934 = vrot.lane.b32.xlu1 %v1932_v45, %s2773_s23 }
0x2662   :  { %v1935_v48 = vpop.permute.xlu1 %1934 }
0x2663   :  { %v1937_v49 = vadd.f32 %v1935_v48, %v1927_v11 }
0x2665   :  { %2755 = vtanh.f32 %v1937_v49 }
0x266f   :  { %v2756_v46 = vpop.eup %2755 }
0x2670   :  { %1940 = vrot.lane.b32.xlu0 %v2756_v46, %s2772_s3 }
0x26e2   :  { %v1941_v2 = vpop.permute.xlu0 %1940 }
0x26e3   :  { %v1943_v52 = vmul.f32 %v1941_v2, %v1926_v43 }
0x26e5   :  { %1946 = vrot.lane.b32.xlu1 %v1943_v52, %s2773_s23 }
0x2757   :  { %v1947_v53 = vpop.permute.xlu1 %1946 }
0x2758   :  { %2509 = vmatmul.mubr.msk.f32.vlgmr.msra.gmra.mrb[18].mxu1 %vm200_vm6, %v1947_v53 }
0x282b   :  { %v2016_v55 = vpop.f32.mrb[18].mxu1 }
0x282c   :  { %v2020_v56 = vadd.f32 %v2016_v55, %v1220_v54  ;;  %v2510_v57 = vpop.f32.mrb[19].mxu1 }
0x282e   :  { %v2191_v58 = vmul.f32 -1.442695, %v2020_v56 }
0x2830   :  { %2757 = vpow2.f32 %v2191_v58 }
0x2831   :  { %2759 = vtanh.f32 %v2020_v56 }
0x283a   :  { %v2758_v59 = vpop.eup %2757 }
0x283b   :  { %v2025_v60 = vadd.f32 1.0, %v2758_v59  ;;  %v2760_v61 = vpop.eup %2759 }
0x283d   :  { %2761 = vrcp.f32 %v2025_v60 }
0x2847   :  { %v2762_v3 = vpop.eup %2761 }
0x2848   :  { %v2028_v44 = vsel %vm2878_vm5, %v2760_v61, %v2762_v3 }
0x2849   :  { %2031 = vrot.lane.b32.xlu0 %v2028_v44, %s2772_s3  ;;  %v2029_v17 = vmul.f32 %v2028_v44, %v1937_v49 }
0x28bb   :  { %v2032_v5 = vpop.permute.xlu0 %2031 }
0x28bc   :  { %v2034_v7 = vmul.f32 %v2032_v5, %v2028_v44 }
0x28be   :  { %2036 = vrot.lane.b32.xlu1 %v2034_v7, %s2773_s23 }
0x2930   :  { %v2037_v9 = vpop.permute.xlu1 %2036 }
0x2931   :  { %v2039_v13 = vadd.f32 %v2037_v9, %v2029_v17 }
0x2933   :  { %2763 = vtanh.f32 %v2039_v13 }
0x293d   :  { %v2764_v18 = vpop.eup %2763 }
0x293e   :  { %2042 = vrot.lane.b32.xlu0 %v2764_v18, %s2772_s3 }
0x29b0   :  { %v2043_v10 = vpop.permute.xlu0 %2042 }
0x29b1   :  { %v2045_v19 = vmul.f32 %v2043_v10, %v2028_v44 }
0x29b3   :  { %2058 = vrot.lane.b32.xlu1 %v2045_v19, %s2773_s23 }
0x2a25   :  { %v2059_v62 = vpop.permute.xlu1 %2058 }
0x2a26   :  { %2520 = vmatmul.mubr.msk.f32.vlgmr.msra.gmra.mrb[28].mxu0 %vm200_vm6, %v2059_v62 }
0x2af9   :  { %v2128_v21 = vpop.f32.mrb[28].mxu0 }
0x2afa   :  { %v2129_v22 = vadd.f32 %v2192_v20, %v2128_v21  ;;  %v2521_v12 = vpop.f32.mrb[29].mxu0 }
0x2afc   :  { %v2194_v1 = vmul.f32 -1.442695, %v2129_v22 }
0x2afe   :  { %2765 = vpow2.f32 %v2194_v1 }
0x2b08   :  { %v2766_v0 = vpop.eup %2765 }
0x2b09   :  { %v2135_v24 = vadd.f32 1.0, %v2766_v0 }
0x2b0b   :  { %2767 = vrcp.f32 %v2135_v24 }
0x2b15   :  { %v2768_v25 = vpop.eup %2767 }
0x2b16   :  { %2138 = vst [vmem:[%s3228_s9] sm:$0xff] %v2768_v25 }

</bundles_post_ra>
